<compile_context>
chip_gen: v7x
topology: tpu7x:2x2x1
jax: 0.10.0
libtpu: 0.0.40
codegen_flags: <defaults>
</compile_context>

<pallas_src>
import jax
import jax.numpy as jnp
from jax import lax
from jax.experimental import pallas as pl
from jax.experimental.pallas import tpu as pltpu

KERNEL_SIZE = 3
NUM_BLOCKS = 2
NUM_FILTERS = 8
BN_EPS = 1e-5


# ------------------------------ fused kernel ------------------------------- #

def _make_repr_kernel(height, width, out_dim):
    F = NUM_FILTERS
    HW = height * width

    def shift_lanes(a, s):
        # Zero-filled lane shift: t[:, l] = a[:, l + s] if 0 <= l + s < HW else 0.
        # Static slice + concat -> unambiguous semantics (no roll-direction probe).
        if s == 0:
            return a
        pad = jnp.zeros((a.shape[0], abs(s)), a.dtype)
        if s > 0:
            return jnp.concatenate([a[:, s:], pad], axis=1)
        return jnp.concatenate([pad, a[:, :HW + s]], axis=1)

    def kernel(x_ref, wconv_ref, b0_ref, wlcat_ref, bl_ref, out_ref):
        # Only two x-boundary masks are needed: the dy = +-1 out-of-image taps
        # are already zero-filled by shift_lanes (each grid block holds exactly
        # one image).  Built once per block at full (F, HW) shape and applied
        # by multiplication, so no per-tap jnp.where / broadcast re-emission.
        xpos = lax.broadcasted_iota(jnp.int32, (F, HW), 1) % width
        mask_hi = (xpos < width - 1).astype(jnp.float32)   # taps with dx = +1
        mask_lo = (xpos >= 1).astype(jnp.float32)          # taps with dx = -1

        def conv3x3(a, layer):
            # 'same' 3x3 conv as 9 accumulating (F, F) @ (F, HW) bf16 matmuls
            # with f32 accumulation; only one shifted tap live at a time.
            acc = None
            k = 0
            for dy in (-1, 0, 1):
                for dx in (-1, 0, 1):
                    t = shift_lanes(a, dy * width + dx)
                    if dx == 1:
                        t = t * mask_hi
                    elif dx == -1:
                        t = t * mask_lo
                    d = jnp.dot(wconv_ref[layer, k], t.astype(jnp.bfloat16),
                                preferred_element_type=jnp.float32)
                    acc = d if acc is None else acc + d
                    k += 1
            return acc                                       # (F, HW) f32

        # layer0: conv -> folded eval-mode BatchNorm -> ReLU
        h = jnp.maximum(conv3x3(x_ref[...], 0) + b0_ref[...], 0.0)
        # residual blocks: relu(h + conv(h))
        for b in range(NUM_BLOCKS):
            h = jnp.maximum(h + conv3x3(h, 1 + b), 0.0)

        # Fused Linear + bias + ReLU without the torch-order flatten:
        #   G = h @ WLcat, with WLcat[hw, f*out + o] = wl[o, f*HW + hw]
        #   out[o] = sum_f G[f, f*out + o]
        G = jnp.dot(h.astype(jnp.bfloat16), wlcat_ref[...],
                    preferred_element_type=jnp.float32)       # (F, F*out) f32
        col = lax.broadcasted_iota(jnp.int32, (F, F * out_dim), 1)
        row = lax.broadcasted_iota(jnp.int32, (F, F * out_dim), 0)
        bd = (col >= row * out_dim) & (col < row * out_dim + out_dim)
        r = jnp.sum(G * bd.astype(jnp.float32), axis=0, keepdims=True)
        span = F * out_dim                                    # F is a power of 2
        while span > out_dim:
            half = span // 2
            r = r[:, :half] + r[:, half:span]
            span = half
        out_ref[0] = jnp.maximum(r + bl_ref[...], 0.0)        # (1, out)

    return kernel


# ------------------------------ wrappers ----------------------------------- #

def init_params(key, input_shape, output_shape):
    cin, H, W = input_shape
    F = NUM_FILTERS
    ks = jax.random.split(key, 2 + NUM_BLOCKS + 2)
    # conv weights in PyTorch OIHW layout; scales close to torch's default init
    w0 = jax.random.normal(ks[0], (F, cin, 3, 3), jnp.float32) * 0.1
    wres = [jax.random.normal(ks[1 + b], (F, F, 3, 3), jnp.float32) * 0.1
            for b in range(NUM_BLOCKS)]
    # BatchNorm2d defaults (eval mode): gamma=1, beta=0, running stats (0, 1)
    gamma = jnp.ones((F,), jnp.float32)
    beta = jnp.zeros((F,), jnp.float32)
    r_mean = jnp.zeros((F,), jnp.float32)
    r_var = jnp.ones((F,), jnp.float32)
    # Linear: torch weight (out, C*H*W) over the NCHW flatten order, plus bias
    wl = jax.random.normal(ks[1 + NUM_BLOCKS], (output_shape, F * H * W),
                           jnp.float32) * 0.02
    bl = jax.random.normal(ks[2 + NUM_BLOCKS], (output_shape,), jnp.float32) * 0.02
    return dict(w0=w0, wres=wres, gamma=gamma, beta=beta,
                r_mean=r_mean, r_var=r_var, wl=wl, bl=bl)


def prepare_params(params, input_shape):
    """Fold BN and repack parameters into kernel-ready tensors.

    Runs once per parameter update (outside the per-forward path).
    """
    cin, H, W = input_shape
    F = NUM_FILTERS
    HW = H * W

    def conv_taps(w_oihw):
        # OIHW -> (9, F_out, F_in) with input channels zero-padded to F;
        # tap index k = (dy+1)*3 + (dx+1), matching the kernel's tap loop.
        w = jnp.pad(w_oihw, ((0, 0), (0, F - w_oihw.shape[1]), (0, 0), (0, 0)))
        return jnp.transpose(w, (2, 3, 0, 1)).reshape(9, F, F)

    scale = params["gamma"] / jnp.sqrt(params["r_var"] + BN_EPS)
    shift = params["beta"] - params["r_mean"] * scale
    w0 = conv_taps(params["w0"]) * scale[None, :, None]        # BN scale folded
    wconv = jnp.stack([w0] + [conv_taps(w) for w in params["wres"]], axis=0)

    # Linear weight (out, F*HW) over the torch NCHW flatten order, re-indexed
    # to WLcat[hw, f*out + o] = wl[o, f*HW + hw] so the kernel never needs the
    # (F, (N, HW)) -> (N, (F, HW)) relayout.
    out_dim = params["wl"].shape[0]
    wlcat = jnp.transpose(params["wl"].reshape(out_dim, F, HW),
                          (2, 1, 0)).reshape(HW, F * out_dim)

    return dict(
        wconv=wconv.astype(jnp.bfloat16),        # (1+blocks, 9, F, F)  bf16
        b0=shift.reshape(F, 1),                  # folded BN shift      f32
        wlcat=wlcat.astype(jnp.bfloat16),        # (HW, F*out)          bf16
        bl=params["bl"].reshape(1, -1),          # (1, out)             f32
    )


def representation_forward(x_nchw, prepped):
    batch, cin, height, width = x_nchw.shape
    F = NUM_FILTERS
    HW = height * width
    assert cin <= F
    # TODO(synk): lane-pad H*W to a multiple of 128 for non-conforming boards.
    assert HW % 128 == 0, "lane tile (H*W) must be a multiple of 128"
    out_dim = int(prepped["bl"].shape[-1])

    # NCHW -> channel-major (F, N*HW) with input channels zero-padded to F.
    x2d = jnp.transpose(x_nchw, (1, 0, 2, 3)).reshape(cin, batch * HW)
    x2d = jnp.pad(x2d, ((0, F - cin), (0, 0)))

    kernel = _make_repr_kernel(height, width, out_dim)
    out3 = pl.pallas_call(
        kernel,
        out_shape=jax.ShapeDtypeStruct((batch, 1, out_dim), jnp.float32),
        grid=(batch,),
        in_specs=[
            pl.BlockSpec((F, HW), lambda n: (0, n)),               # one image
            pl.BlockSpec(prepped["wconv"].shape, lambda n: (0, 0, 0, 0)),
            pl.BlockSpec(prepped["b0"].shape, lambda n: (0, 0)),
            pl.BlockSpec(prepped["wlcat"].shape, lambda n: (0, 0)),
            pl.BlockSpec(prepped["bl"].shape, lambda n: (0, 0)),
        ],
        out_specs=pl.BlockSpec((1, 1, out_dim), lambda n: (n, 0, 0)),
        compiler_params=pltpu.CompilerParams(
            dimension_semantics=("parallel",)),
    )(x2d, prepped["wconv"], prepped["b0"], prepped["wlcat"], prepped["bl"])
    # (batch, 1, out) keeps the out block's last two dims equal to the array
    # dims (layout-legal); out_dim < 128 so the store is a small masked vst
    # either way (cosmetic at this size).
    return out3.reshape(batch, out_dim)


def reference_forward(x_nchw, params):
    # pure-JAX f32 reference of the PyTorch forward (eval-mode BN)
    def conv(x, w):
        return lax.conv_general_dilated(
            x, w, (1, 1), "SAME",
            dimension_numbers=("NCHW", "OIHW", "NCHW"),
            precision=lax.Precision.HIGHEST)

    h = conv(x_nchw, params["w0"])
    sc = params["gamma"] / jnp.sqrt(params["r_var"] + BN_EPS)
    sh = params["beta"] - params["r_mean"] * sc
    h = h * sc[None, :, None, None] + sh[None, :, None, None]
    h = jax.nn.relu(h)
    for w in params["wres"]:
        h = jax.nn.relu(h + conv(h, w))
    hf = h.reshape(h.shape[0], -1)
    return jax.nn.relu(hf @ params["wl"].T + params["bl"])


if __name__ == "__main__":
    input_shape = (4, 16, 16)   # (C, H, W), as the torch module's input_shape
    output_shape = 32
    batch = 2

    key = jax.random.PRNGKey(0)
    kx, kp = jax.random.split(key)
    x = jax.random.normal(kx, (batch,) + input_shape, jnp.float32)
    params = init_params(kp, input_shape, output_shape)
    prepped = prepare_params(params, input_shape)

    rp = jax.block_until_ready(representation_forward(x, prepped))
    ref = jax.block_until_ready(reference_forward(x, params))

    assert rp.shape == (batch, output_shape), rp.shape
    assert rp.dtype == jnp.float32
    # bf16 MXU operands vs. the f32 reference -> slightly looser tolerance.
    assert bool(jnp.allclose(rp, ref, rtol=5e-2, atol=5e-2)), (
        f"max abs err {float(jnp.max(jnp.abs(rp - ref)))}")
    print("KERNEL_OK")
</pallas_src>

<mosaic_0001>
module attributes {stable_mosaic.version = 11 : i64} {
  func.func @kernel(%arg0: i32, %arg1: memref<8x256xf32, #tpu.memory_space<vmem>>, %arg2: memref<3x9x8x8xbf16, #tpu.memory_space<vmem>>, %arg3: memref<8x1xf32, #tpu.memory_space<vmem>>, %arg4: memref<256x256xbf16, #tpu.memory_space<vmem>>, %arg5: memref<1x32xf32, #tpu.memory_space<vmem>>, %arg6: memref<1x1x32xf32, #tpu.memory_space<vmem>>) attributes {dimension_semantics = [#tpu.dimension_semantics<parallel>], iteration_bounds = array<i64: 2>, scalar_prefetch = 0 : i64, scratch_operands = 0 : i64, tpu.core_type = #tpu.core_type<tc>, window_params = [{transform_indices = @transform_0, window_bounds = array<i64: 8, 256>}, {pipeline_mode = #tpu.pipeline_mode<synchronous>, transform_indices = @transform_1, window_bounds = array<i64: 3, 9, 8, 8>}, {pipeline_mode = #tpu.pipeline_mode<synchronous>, transform_indices = @transform_2, window_bounds = array<i64: 8, 1>}, {pipeline_mode = #tpu.pipeline_mode<synchronous>, transform_indices = @transform_3, window_bounds = array<i64: 256, 256>}, {pipeline_mode = #tpu.pipeline_mode<synchronous>, transform_indices = @transform_4, window_bounds = array<i64: 1, 32>}, {transform_indices = @transform_5, window_bounds = array<i64: 1, 1, 32>}]} {
    %0 = tpu.iota {dimensions = array<i32: 1>} : vector<8x256xi32>
    %c16_i32 = arith.constant 16 : i32
    %c0_i32 = arith.constant 0 : i32
    %1 = arith.cmpi eq, %c16_i32, %c0_i32 : i32
    %c1_i32 = arith.constant 1 : i32
    %2 = arith.select %1, %c1_i32, %c16_i32 : i32
    %3 = vector.broadcast %2 : i32 to vector<8x256xi32>
    %4 = arith.remsi %0, %3 : vector<8x256xi32>
    %c0_i32_0 = arith.constant 0 : i32
    %5 = vector.broadcast %c0_i32_0 : i32 to vector<8x256xi32>
    %6 = arith.cmpi ne, %4, %5 : vector<8x256xi32>
    %c0_i32_1 = arith.constant 0 : i32
    %7 = vector.broadcast %c0_i32_1 : i32 to vector<8x256xi32>
    %8 = arith.cmpi slt, %4, %7 : vector<8x256xi32>
    %c0_i32_2 = arith.constant 0 : i32
    %9 = arith.cmpi slt, %2, %c0_i32_2 : i32
    %10 = vector.broadcast %9 : i1 to vector<8x256xi1>
    %11 = vector.broadcast %10 : vector<8x256xi1> to vector<8x256xi1>
    %12 = arith.xori %8, %11 : vector<8x256xi1>
    %13 = arith.andi %12, %6 : vector<8x256xi1>
    %14 = vector.broadcast %2 : i32 to vector<8x256xi32>
    %15 = arith.addi %4, %14 : vector<8x256xi32>
    %16 = arith.select %13, %15, %4 : vector<8x256xi1>, vector<8x256xi32>
    %c15_i32 = arith.constant 15 : i32
    %17 = vector.broadcast %c15_i32 : i32 to vector<8x256xi32>
    %18 = arith.cmpi slt, %16, %17 : vector<8x256xi32>
    %19 = arith.extui %18 : vector<8x256xi1> to vector<8x256xi32>
    %20 = arith.sitofp %19 : vector<8x256xi32> to vector<8x256xf32>
    %c1_i32_3 = arith.constant 1 : i32
    %21 = vector.broadcast %c1_i32_3 : i32 to vector<8x256xi32>
    %22 = arith.cmpi sge, %16, %21 : vector<8x256xi32>
    %23 = arith.extui %22 : vector<8x256xi1> to vector<8x256xi32>
    %24 = arith.sitofp %23 : vector<8x256xi32> to vector<8x256xf32>
    %c0 = arith.constant 0 : index
    %c0_4 = arith.constant 0 : index
    %25 = vector.load %arg1[%c0, %c0_4] : memref<8x256xf32, #tpu.memory_space<vmem>>, vector<8x256xf32>
    %cst = arith.constant 0.000000e+00 : f32
    %26 = vector.broadcast %cst : f32 to vector<8x17xf32>
    %27 = vector.extract_strided_slice %25 {offsets = [0, 0], sizes = [8, 239], strides = [1, 1]} : vector<8x256xf32> to vector<8x239xf32>
    %28 = tpu.concatenate %26, %27 in 1 : vector<8x17xf32>, vector<8x239xf32> -> vector<8x256xf32>
    %29 = arith.mulf %28, %24 : vector<8x256xf32>
    %c0_5 = arith.constant 0 : index
    %c0_6 = arith.constant 0 : index
    %c0_7 = arith.constant 0 : index
    %c0_8 = arith.constant 0 : index
    %30 = vector.load %arg2[%c0_5, %c0_6, %c0_7, %c0_8] : memref<3x9x8x8xbf16, #tpu.memory_space<vmem>>, vector<1x1x8x8xbf16>
    %31 = vector.shape_cast %30 : vector<1x1x8x8xbf16> to vector<8x8xbf16>
    %32 = arith.truncf %29 : vector<8x256xf32> to vector<8x256xbf16>
    %cst_9 = arith.constant dense<0.000000e+00> : vector<8x256xf32>
    %33 = tpu.matmul %31, %32, %cst_9 {dimension_numbers = #tpu.dot_dimension_numbers<[1], [0], [0], [1], [0, 0, 1, 1], [], []>} : vector<8x8xbf16>, vector<8x256xbf16>, vector<8x256xf32> -> vector<8x256xf32>
    %cst_10 = arith.constant 0.000000e+00 : f32
    %34 = vector.broadcast %cst_10 : f32 to vector<8x16xf32>
    %35 = vector.extract_strided_slice %25 {offsets = [0, 0], sizes = [8, 240], strides = [1, 1]} : vector<8x256xf32> to vector<8x240xf32>
    %36 = tpu.concatenate %34, %35 in 1 : vector<8x16xf32>, vector<8x240xf32> -> vector<8x256xf32>
    %c0_11 = arith.constant 0 : index
    %c1 = arith.constant 1 : index
    %c0_12 = arith.constant 0 : index
    %c0_13 = arith.constant 0 : index
    %37 = vector.load %arg2[%c0_11, %c1, %c0_12, %c0_13] : memref<3x9x8x8xbf16, #tpu.memory_space<vmem>>, vector<1x1x8x8xbf16>
    %38 = vector.shape_cast %37 : vector<1x1x8x8xbf16> to vector<8x8xbf16>
    %39 = arith.truncf %36 : vector<8x256xf32> to vector<8x256xbf16>
    %cst_14 = arith.constant dense<0.000000e+00> : vector<8x256xf32>
    %40 = tpu.matmul %38, %39, %cst_14 {dimension_numbers = #tpu.dot_dimension_numbers<[1], [0], [0], [1], [0, 0, 1, 1], [], []>} : vector<8x8xbf16>, vector<8x256xbf16>, vector<8x256xf32> -> vector<8x256xf32>
    %41 = arith.addf %33, %40 : vector<8x256xf32>
    %cst_15 = arith.constant 0.000000e+00 : f32
    %42 = vector.broadcast %cst_15 : f32 to vector<8x15xf32>
    %43 = vector.extract_strided_slice %25 {offsets = [0, 0], sizes = [8, 241], strides = [1, 1]} : vector<8x256xf32> to vector<8x241xf32>
    %44 = tpu.concatenate %42, %43 in 1 : vector<8x15xf32>, vector<8x241xf32> -> vector<8x256xf32>
    %45 = arith.mulf %44, %20 : vector<8x256xf32>
    %c0_16 = arith.constant 0 : index
    %c2 = arith.constant 2 : index
    %c0_17 = arith.constant 0 : index
    %c0_18 = arith.constant 0 : index
    %46 = vector.load %arg2[%c0_16, %c2, %c0_17, %c0_18] : memref<3x9x8x8xbf16, #tpu.memory_space<vmem>>, vector<1x1x8x8xbf16>
    %47 = vector.shape_cast %46 : vector<1x1x8x8xbf16> to vector<8x8xbf16>
    %48 = arith.truncf %45 : vector<8x256xf32> to vector<8x256xbf16>
    %cst_19 = arith.constant dense<0.000000e+00> : vector<8x256xf32>
    %49 = tpu.matmul %47, %48, %cst_19 {dimension_numbers = #tpu.dot_dimension_numbers<[1], [0], [0], [1], [0, 0, 1, 1], [], []>} : vector<8x8xbf16>, vector<8x256xbf16>, vector<8x256xf32> -> vector<8x256xf32>
    %50 = arith.addf %41, %49 : vector<8x256xf32>
    %cst_20 = arith.constant 0.000000e+00 : f32
    %51 = vector.broadcast %cst_20 : f32 to vector<8x1xf32>
    %52 = vector.extract_strided_slice %25 {offsets = [0, 0], sizes = [8, 255], strides = [1, 1]} : vector<8x256xf32> to vector<8x255xf32>
    %53 = tpu.concatenate %51, %52 in 1 : vector<8x1xf32>, vector<8x255xf32> -> vector<8x256xf32>
    %54 = arith.mulf %53, %24 : vector<8x256xf32>
    %c0_21 = arith.constant 0 : index
    %c3 = arith.constant 3 : index
    %c0_22 = arith.constant 0 : index
    %c0_23 = arith.constant 0 : index
    %55 = vector.load %arg2[%c0_21, %c3, %c0_22, %c0_23] : memref<3x9x8x8xbf16, #tpu.memory_space<vmem>>, vector<1x1x8x8xbf16>
    %56 = vector.shape_cast %55 : vector<1x1x8x8xbf16> to vector<8x8xbf16>
    %57 = arith.truncf %54 : vector<8x256xf32> to vector<8x256xbf16>
    %cst_24 = arith.constant dense<0.000000e+00> : vector<8x256xf32>
    %58 = tpu.matmul %56, %57, %cst_24 {dimension_numbers = #tpu.dot_dimension_numbers<[1], [0], [0], [1], [0, 0, 1, 1], [], []>} : vector<8x8xbf16>, vector<8x256xbf16>, vector<8x256xf32> -> vector<8x256xf32>
    %59 = arith.addf %50, %58 : vector<8x256xf32>
    %c0_25 = arith.constant 0 : index
    %c4 = arith.constant 4 : index
    %c0_26 = arith.constant 0 : index
    %c0_27 = arith.constant 0 : index
    %60 = vector.load %arg2[%c0_25, %c4, %c0_26, %c0_27] : memref<3x9x8x8xbf16, #tpu.memory_space<vmem>>, vector<1x1x8x8xbf16>
    %61 = vector.shape_cast %60 : vector<1x1x8x8xbf16> to vector<8x8xbf16>
    %62 = arith.truncf %25 : vector<8x256xf32> to vector<8x256xbf16>
    %cst_28 = arith.constant dense<0.000000e+00> : vector<8x256xf32>
    %63 = tpu.matmul %61, %62, %cst_28 {dimension_numbers = #tpu.dot_dimension_numbers<[1], [0], [0], [1], [0, 0, 1, 1], [], []>} : vector<8x8xbf16>, vector<8x256xbf16>, vector<8x256xf32> -> vector<8x256xf32>
    %64 = arith.addf %59, %63 : vector<8x256xf32>
    %cst_29 = arith.constant 0.000000e+00 : f32
    %65 = vector.broadcast %cst_29 : f32 to vector<8x1xf32>
    %66 = vector.extract_strided_slice %25 {offsets = [0, 1], sizes = [8, 255], strides = [1, 1]} : vector<8x256xf32> to vector<8x255xf32>
    %67 = tpu.concatenate %66, %65 in 1 : vector<8x255xf32>, vector<8x1xf32> -> vector<8x256xf32>
    %68 = arith.mulf %67, %20 : vector<8x256xf32>
    %c0_30 = arith.constant 0 : index
    %c5 = arith.constant 5 : index
    %c0_31 = arith.constant 0 : index
    %c0_32 = arith.constant 0 : index
    %69 = vector.load %arg2[%c0_30, %c5, %c0_31, %c0_32] : memref<3x9x8x8xbf16, #tpu.memory_space<vmem>>, vector<1x1x8x8xbf16>
    %70 = vector.shape_cast %69 : vector<1x1x8x8xbf16> to vector<8x8xbf16>
    %71 = arith.truncf %68 : vector<8x256xf32> to vector<8x256xbf16>
    %cst_33 = arith.constant dense<0.000000e+00> : vector<8x256xf32>
    %72 = tpu.matmul %70, %71, %cst_33 {dimension_numbers = #tpu.dot_dimension_numbers<[1], [0], [0], [1], [0, 0, 1, 1], [], []>} : vector<8x8xbf16>, vector<8x256xbf16>, vector<8x256xf32> -> vector<8x256xf32>
    %73 = arith.addf %64, %72 : vector<8x256xf32>
    %cst_34 = arith.constant 0.000000e+00 : f32
    %74 = vector.broadcast %cst_34 : f32 to vector<8x15xf32>
    %75 = vector.extract_strided_slice %25 {offsets = [0, 15], sizes = [8, 241], strides = [1, 1]} : vector<8x256xf32> to vector<8x241xf32>
    %76 = tpu.concatenate %75, %74 in 1 : vector<8x241xf32>, vector<8x15xf32> -> vector<8x256xf32>
    %77 = arith.mulf %76, %24 : vector<8x256xf32>
    %c0_35 = arith.constant 0 : index
    %c6 = arith.constant 6 : index
    %c0_36 = arith.constant 0 : index
    %c0_37 = arith.constant 0 : index
    %78 = vector.load %arg2[%c0_35, %c6, %c0_36, %c0_37] : memref<3x9x8x8xbf16, #tpu.memory_space<vmem>>, vector<1x1x8x8xbf16>
    %79 = vector.shape_cast %78 : vector<1x1x8x8xbf16> to vector<8x8xbf16>
    %80 = arith.truncf %77 : vector<8x256xf32> to vector<8x256xbf16>
    %cst_38 = arith.constant dense<0.000000e+00> : vector<8x256xf32>
    %81 = tpu.matmul %79, %80, %cst_38 {dimension_numbers = #tpu.dot_dimension_numbers<[1], [0], [0], [1], [0, 0, 1, 1], [], []>} : vector<8x8xbf16>, vector<8x256xbf16>, vector<8x256xf32> -> vector<8x256xf32>
    %82 = arith.addf %73, %81 : vector<8x256xf32>
    %cst_39 = arith.constant 0.000000e+00 : f32
    %83 = vector.broadcast %cst_39 : f32 to vector<8x16xf32>
    %84 = vector.extract_strided_slice %25 {offsets = [0, 16], sizes = [8, 240], strides = [1, 1]} : vector<8x256xf32> to vector<8x240xf32>
    %85 = tpu.concatenate %84, %83 in 1 : vector<8x240xf32>, vector<8x16xf32> -> vector<8x256xf32>
    %c0_40 = arith.constant 0 : index
    %c7 = arith.constant 7 : index
    %c0_41 = arith.constant 0 : index
    %c0_42 = arith.constant 0 : index
    %86 = vector.load %arg2[%c0_40, %c7, %c0_41, %c0_42] : memref<3x9x8x8xbf16, #tpu.memory_space<vmem>>, vector<1x1x8x8xbf16>
    %87 = vector.shape_cast %86 : vector<1x1x8x8xbf16> to vector<8x8xbf16>
    %88 = arith.truncf %85 : vector<8x256xf32> to vector<8x256xbf16>
    %cst_43 = arith.constant dense<0.000000e+00> : vector<8x256xf32>
    %89 = tpu.matmul %87, %88, %cst_43 {dimension_numbers = #tpu.dot_dimension_numbers<[1], [0], [0], [1], [0, 0, 1, 1], [], []>} : vector<8x8xbf16>, vector<8x256xbf16>, vector<8x256xf32> -> vector<8x256xf32>
    %90 = arith.addf %82, %89 : vector<8x256xf32>
    %cst_44 = arith.constant 0.000000e+00 : f32
    %91 = vector.broadcast %cst_44 : f32 to vector<8x17xf32>
    %92 = vector.extract_strided_slice %25 {offsets = [0, 17], sizes = [8, 239], strides = [1, 1]} : vector<8x256xf32> to vector<8x239xf32>
    %93 = tpu.concatenate %92, %91 in 1 : vector<8x239xf32>, vector<8x17xf32> -> vector<8x256xf32>
    %94 = arith.mulf %93, %20 : vector<8x256xf32>
    %c0_45 = arith.constant 0 : index
    %c8 = arith.constant 8 : index
    %c0_46 = arith.constant 0 : index
    %c0_47 = arith.constant 0 : index
    %95 = vector.load %arg2[%c0_45, %c8, %c0_46, %c0_47] : memref<3x9x8x8xbf16, #tpu.memory_space<vmem>>, vector<1x1x8x8xbf16>
    %96 = vector.shape_cast %95 : vector<1x1x8x8xbf16> to vector<8x8xbf16>
    %97 = arith.truncf %94 : vector<8x256xf32> to vector<8x256xbf16>
    %cst_48 = arith.constant dense<0.000000e+00> : vector<8x256xf32>
    %98 = tpu.matmul %96, %97, %cst_48 {dimension_numbers = #tpu.dot_dimension_numbers<[1], [0], [0], [1], [0, 0, 1, 1], [], []>} : vector<8x8xbf16>, vector<8x256xbf16>, vector<8x256xf32> -> vector<8x256xf32>
    %99 = arith.addf %90, %98 : vector<8x256xf32>
    %c0_49 = arith.constant 0 : index
    %c0_50 = arith.constant 0 : index
    %100 = vector.load %arg3[%c0_49, %c0_50] : memref<8x1xf32, #tpu.memory_space<vmem>>, vector<8x1xf32>
    %101 = vector.broadcast %100 : vector<8x1xf32> to vector<8x256xf32>
    %102 = arith.addf %99, %101 : vector<8x256xf32>
    %cst_51 = arith.constant 0.000000e+00 : f32
    %103 = vector.broadcast %cst_51 : f32 to vector<8x256xf32>
    %104 = arith.maximumf %102, %103 : vector<8x256xf32>
    %cst_52 = arith.constant 0.000000e+00 : f32
    %105 = vector.broadcast %cst_52 : f32 to vector<8x17xf32>
    %106 = vector.extract_strided_slice %104 {offsets = [0, 0], sizes = [8, 239], strides = [1, 1]} : vector<8x256xf32> to vector<8x239xf32>
    %107 = tpu.concatenate %105, %106 in 1 : vector<8x17xf32>, vector<8x239xf32> -> vector<8x256xf32>
    %108 = arith.mulf %107, %24 : vector<8x256xf32>
    %c1_53 = arith.constant 1 : index
    %c0_54 = arith.constant 0 : index
    %c0_55 = arith.constant 0 : index
    %c0_56 = arith.constant 0 : index
    %109 = vector.load %arg2[%c1_53, %c0_54, %c0_55, %c0_56] : memref<3x9x8x8xbf16, #tpu.memory_space<vmem>>, vector<1x1x8x8xbf16>
    %110 = vector.shape_cast %109 : vector<1x1x8x8xbf16> to vector<8x8xbf16>
    %111 = arith.truncf %108 : vector<8x256xf32> to vector<8x256xbf16>
    %cst_57 = arith.constant dense<0.000000e+00> : vector<8x256xf32>
    %112 = tpu.matmul %110, %111, %cst_57 {dimension_numbers = #tpu.dot_dimension_numbers<[1], [0], [0], [1], [0, 0, 1, 1], [], []>} : vector<8x8xbf16>, vector<8x256xbf16>, vector<8x256xf32> -> vector<8x256xf32>
    %cst_58 = arith.constant 0.000000e+00 : f32
    %113 = vector.broadcast %cst_58 : f32 to vector<8x16xf32>
    %114 = vector.extract_strided_slice %104 {offsets = [0, 0], sizes = [8, 240], strides = [1, 1]} : vector<8x256xf32> to vector<8x240xf32>
    %115 = tpu.concatenate %113, %114 in 1 : vector<8x16xf32>, vector<8x240xf32> -> vector<8x256xf32>
    %c1_59 = arith.constant 1 : index
    %c1_60 = arith.constant 1 : index
    %c0_61 = arith.constant 0 : index
    %c0_62 = arith.constant 0 : index
    %116 = vector.load %arg2[%c1_59, %c1_60, %c0_61, %c0_62] : memref<3x9x8x8xbf16, #tpu.memory_space<vmem>>, vector<1x1x8x8xbf16>
    %117 = vector.shape_cast %116 : vector<1x1x8x8xbf16> to vector<8x8xbf16>
    %118 = arith.truncf %115 : vector<8x256xf32> to vector<8x256xbf16>
    %cst_63 = arith.constant dense<0.000000e+00> : vector<8x256xf32>
    %119 = tpu.matmul %117, %118, %cst_63 {dimension_numbers = #tpu.dot_dimension_numbers<[1], [0], [0], [1], [0, 0, 1, 1], [], []>} : vector<8x8xbf16>, vector<8x256xbf16>, vector<8x256xf32> -> vector<8x256xf32>
    %120 = arith.addf %112, %119 : vector<8x256xf32>
    %cst_64 = arith.constant 0.000000e+00 : f32
    %121 = vector.broadcast %cst_64 : f32 to vector<8x15xf32>
    %122 = vector.extract_strided_slice %104 {offsets = [0, 0], sizes = [8, 241], strides = [1, 1]} : vector<8x256xf32> to vector<8x241xf32>
    %123 = tpu.concatenate %121, %122 in 1 : vector<8x15xf32>, vector<8x241xf32> -> vector<8x256xf32>
    %124 = arith.mulf %123, %20 : vector<8x256xf32>
    %c1_65 = arith.constant 1 : index
    %c2_66 = arith.constant 2 : index
    %c0_67 = arith.constant 0 : index
    %c0_68 = arith.constant 0 : index
    %125 = vector.load %arg2[%c1_65, %c2_66, %c0_67, %c0_68] : memref<3x9x8x8xbf16, #tpu.memory_space<vmem>>, vector<1x1x8x8xbf16>
    %126 = vector.shape_cast %125 : vector<1x1x8x8xbf16> to vector<8x8xbf16>
    %127 = arith.truncf %124 : vector<8x256xf32> to vector<8x256xbf16>
    %cst_69 = arith.constant dense<0.000000e+00> : vector<8x256xf32>
    %128 = tpu.matmul %126, %127, %cst_69 {dimension_numbers = #tpu.dot_dimension_numbers<[1], [0], [0], [1], [0, 0, 1, 1], [], []>} : vector<8x8xbf16>, vector<8x256xbf16>, vector<8x256xf32> -> vector<8x256xf32>
    %129 = arith.addf %120, %128 : vector<8x256xf32>
    %cst_70 = arith.constant 0.000000e+00 : f32
    %130 = vector.broadcast %cst_70 : f32 to vector<8x1xf32>
    %131 = vector.extract_strided_slice %104 {offsets = [0, 0], sizes = [8, 255], strides = [1, 1]} : vector<8x256xf32> to vector<8x255xf32>
    %132 = tpu.concatenate %130, %131 in 1 : vector<8x1xf32>, vector<8x255xf32> -> vector<8x256xf32>
    %133 = arith.mulf %132, %24 : vector<8x256xf32>
    %c1_71 = arith.constant 1 : index
    %c3_72 = arith.constant 3 : index
    %c0_73 = arith.constant 0 : index
    %c0_74 = arith.constant 0 : index
    %134 = vector.load %arg2[%c1_71, %c3_72, %c0_73, %c0_74] : memref<3x9x8x8xbf16, #tpu.memory_space<vmem>>, vector<1x1x8x8xbf16>
    %135 = vector.shape_cast %134 : vector<1x1x8x8xbf16> to vector<8x8xbf16>
    %136 = arith.truncf %133 : vector<8x256xf32> to vector<8x256xbf16>
    %cst_75 = arith.constant dense<0.000000e+00> : vector<8x256xf32>
    %137 = tpu.matmul %135, %136, %cst_75 {dimension_numbers = #tpu.dot_dimension_numbers<[1], [0], [0], [1], [0, 0, 1, 1], [], []>} : vector<8x8xbf16>, vector<8x256xbf16>, vector<8x256xf32> -> vector<8x256xf32>
    %138 = arith.addf %129, %137 : vector<8x256xf32>
    %c1_76 = arith.constant 1 : index
    %c4_77 = arith.constant 4 : index
    %c0_78 = arith.constant 0 : index
    %c0_79 = arith.constant 0 : index
    %139 = vector.load %arg2[%c1_76, %c4_77, %c0_78, %c0_79] : memref<3x9x8x8xbf16, #tpu.memory_space<vmem>>, vector<1x1x8x8xbf16>
    %140 = vector.shape_cast %139 : vector<1x1x8x8xbf16> to vector<8x8xbf16>
    %141 = arith.truncf %104 : vector<8x256xf32> to vector<8x256xbf16>
    %cst_80 = arith.constant dense<0.000000e+00> : vector<8x256xf32>
    %142 = tpu.matmul %140, %141, %cst_80 {dimension_numbers = #tpu.dot_dimension_numbers<[1], [0], [0], [1], [0, 0, 1, 1], [], []>} : vector<8x8xbf16>, vector<8x256xbf16>, vector<8x256xf32> -> vector<8x256xf32>
    %143 = arith.addf %138, %142 : vector<8x256xf32>
    %cst_81 = arith.constant 0.000000e+00 : f32
    %144 = vector.broadcast %cst_81 : f32 to vector<8x1xf32>
    %145 = vector.extract_strided_slice %104 {offsets = [0, 1], sizes = [8, 255], strides = [1, 1]} : vector<8x256xf32> to vector<8x255xf32>
    %146 = tpu.concatenate %145, %144 in 1 : vector<8x255xf32>, vector<8x1xf32> -> vector<8x256xf32>
    %147 = arith.mulf %146, %20 : vector<8x256xf32>
    %c1_82 = arith.constant 1 : index
    %c5_83 = arith.constant 5 : index
    %c0_84 = arith.constant 0 : index
    %c0_85 = arith.constant 0 : index
    %148 = vector.load %arg2[%c1_82, %c5_83, %c0_84, %c0_85] : memref<3x9x8x8xbf16, #tpu.memory_space<vmem>>, vector<1x1x8x8xbf16>
    %149 = vector.shape_cast %148 : vector<1x1x8x8xbf16> to vector<8x8xbf16>
    %150 = arith.truncf %147 : vector<8x256xf32> to vector<8x256xbf16>
    %cst_86 = arith.constant dense<0.000000e+00> : vector<8x256xf32>
    %151 = tpu.matmul %149, %150, %cst_86 {dimension_numbers = #tpu.dot_dimension_numbers<[1], [0], [0], [1], [0, 0, 1, 1], [], []>} : vector<8x8xbf16>, vector<8x256xbf16>, vector<8x256xf32> -> vector<8x256xf32>
    %152 = arith.addf %143, %151 : vector<8x256xf32>
    %cst_87 = arith.constant 0.000000e+00 : f32
    %153 = vector.broadcast %cst_87 : f32 to vector<8x15xf32>
    %154 = vector.extract_strided_slice %104 {offsets = [0, 15], sizes = [8, 241], strides = [1, 1]} : vector<8x256xf32> to vector<8x241xf32>
    %155 = tpu.concatenate %154, %153 in 1 : vector<8x241xf32>, vector<8x15xf32> -> vector<8x256xf32>
    %156 = arith.mulf %155, %24 : vector<8x256xf32>
    %c1_88 = arith.constant 1 : index
    %c6_89 = arith.constant 6 : index
    %c0_90 = arith.constant 0 : index
    %c0_91 = arith.constant 0 : index
    %157 = vector.load %arg2[%c1_88, %c6_89, %c0_90, %c0_91] : memref<3x9x8x8xbf16, #tpu.memory_space<vmem>>, vector<1x1x8x8xbf16>
    %158 = vector.shape_cast %157 : vector<1x1x8x8xbf16> to vector<8x8xbf16>
    %159 = arith.truncf %156 : vector<8x256xf32> to vector<8x256xbf16>
    %cst_92 = arith.constant dense<0.000000e+00> : vector<8x256xf32>
    %160 = tpu.matmul %158, %159, %cst_92 {dimension_numbers = #tpu.dot_dimension_numbers<[1], [0], [0], [1], [0, 0, 1, 1], [], []>} : vector<8x8xbf16>, vector<8x256xbf16>, vector<8x256xf32> -> vector<8x256xf32>
    %161 = arith.addf %152, %160 : vector<8x256xf32>
    %cst_93 = arith.constant 0.000000e+00 : f32
    %162 = vector.broadcast %cst_93 : f32 to vector<8x16xf32>
    %163 = vector.extract_strided_slice %104 {offsets = [0, 16], sizes = [8, 240], strides = [1, 1]} : vector<8x256xf32> to vector<8x240xf32>
    %164 = tpu.concatenate %163, %162 in 1 : vector<8x240xf32>, vector<8x16xf32> -> vector<8x256xf32>
    %c1_94 = arith.constant 1 : index
    %c7_95 = arith.constant 7 : index
    %c0_96 = arith.constant 0 : index
    %c0_97 = arith.constant 0 : index
    %165 = vector.load %arg2[%c1_94, %c7_95, %c0_96, %c0_97] : memref<3x9x8x8xbf16, #tpu.memory_space<vmem>>, vector<1x1x8x8xbf16>
    %166 = vector.shape_cast %165 : vector<1x1x8x8xbf16> to vector<8x8xbf16>
    %167 = arith.truncf %164 : vector<8x256xf32> to vector<8x256xbf16>
    %cst_98 = arith.constant dense<0.000000e+00> : vector<8x256xf32>
    %168 = tpu.matmul %166, %167, %cst_98 {dimension_numbers = #tpu.dot_dimension_numbers<[1], [0], [0], [1], [0, 0, 1, 1], [], []>} : vector<8x8xbf16>, vector<8x256xbf16>, vector<8x256xf32> -> vector<8x256xf32>
    %169 = arith.addf %161, %168 : vector<8x256xf32>
    %cst_99 = arith.constant 0.000000e+00 : f32
    %170 = vector.broadcast %cst_99 : f32 to vector<8x17xf32>
    %171 = vector.extract_strided_slice %104 {offsets = [0, 17], sizes = [8, 239], strides = [1, 1]} : vector<8x256xf32> to vector<8x239xf32>
    %172 = tpu.concatenate %171, %170 in 1 : vector<8x239xf32>, vector<8x17xf32> -> vector<8x256xf32>
    %173 = arith.mulf %172, %20 : vector<8x256xf32>
    %c1_100 = arith.constant 1 : index
    %c8_101 = arith.constant 8 : index
    %c0_102 = arith.constant 0 : index
    %c0_103 = arith.constant 0 : index
    %174 = vector.load %arg2[%c1_100, %c8_101, %c0_102, %c0_103] : memref<3x9x8x8xbf16, #tpu.memory_space<vmem>>, vector<1x1x8x8xbf16>
    %175 = vector.shape_cast %174 : vector<1x1x8x8xbf16> to vector<8x8xbf16>
    %176 = arith.truncf %173 : vector<8x256xf32> to vector<8x256xbf16>
    %cst_104 = arith.constant dense<0.000000e+00> : vector<8x256xf32>
    %177 = tpu.matmul %175, %176, %cst_104 {dimension_numbers = #tpu.dot_dimension_numbers<[1], [0], [0], [1], [0, 0, 1, 1], [], []>} : vector<8x8xbf16>, vector<8x256xbf16>, vector<8x256xf32> -> vector<8x256xf32>
    %178 = arith.addf %169, %177 : vector<8x256xf32>
    %179 = arith.addf %104, %178 : vector<8x256xf32>
    %cst_105 = arith.constant 0.000000e+00 : f32
    %180 = vector.broadcast %cst_105 : f32 to vector<8x256xf32>
    %181 = arith.maximumf %179, %180 : vector<8x256xf32>
    %cst_106 = arith.constant 0.000000e+00 : f32
    %182 = vector.broadcast %cst_106 : f32 to vector<8x17xf32>
    %183 = vector.extract_strided_slice %181 {offsets = [0, 0], sizes = [8, 239], strides = [1, 1]} : vector<8x256xf32> to vector<8x239xf32>
    %184 = tpu.concatenate %182, %183 in 1 : vector<8x17xf32>, vector<8x239xf32> -> vector<8x256xf32>
    %185 = arith.mulf %184, %24 : vector<8x256xf32>
    %c2_107 = arith.constant 2 : index
    %c0_108 = arith.constant 0 : index
    %c0_109 = arith.constant 0 : index
    %c0_110 = arith.constant 0 : index
    %186 = vector.load %arg2[%c2_107, %c0_108, %c0_109, %c0_110] : memref<3x9x8x8xbf16, #tpu.memory_space<vmem>>, vector<1x1x8x8xbf16>
    %187 = vector.shape_cast %186 : vector<1x1x8x8xbf16> to vector<8x8xbf16>
    %188 = arith.truncf %185 : vector<8x256xf32> to vector<8x256xbf16>
    %cst_111 = arith.constant dense<0.000000e+00> : vector<8x256xf32>
    %189 = tpu.matmul %187, %188, %cst_111 {dimension_numbers = #tpu.dot_dimension_numbers<[1], [0], [0], [1], [0, 0, 1, 1], [], []>} : vector<8x8xbf16>, vector<8x256xbf16>, vector<8x256xf32> -> vector<8x256xf32>
    %cst_112 = arith.constant 0.000000e+00 : f32
    %190 = vector.broadcast %cst_112 : f32 to vector<8x16xf32>
    %191 = vector.extract_strided_slice %181 {offsets = [0, 0], sizes = [8, 240], strides = [1, 1]} : vector<8x256xf32> to vector<8x240xf32>
    %192 = tpu.concatenate %190, %191 in 1 : vector<8x16xf32>, vector<8x240xf32> -> vector<8x256xf32>
    %c2_113 = arith.constant 2 : index
    %c1_114 = arith.constant 1 : index
    %c0_115 = arith.constant 0 : index
    %c0_116 = arith.constant 0 : index
    %193 = vector.load %arg2[%c2_113, %c1_114, %c0_115, %c0_116] : memref<3x9x8x8xbf16, #tpu.memory_space<vmem>>, vector<1x1x8x8xbf16>
    %194 = vector.shape_cast %193 : vector<1x1x8x8xbf16> to vector<8x8xbf16>
    %195 = arith.truncf %192 : vector<8x256xf32> to vector<8x256xbf16>
    %cst_117 = arith.constant dense<0.000000e+00> : vector<8x256xf32>
    %196 = tpu.matmul %194, %195, %cst_117 {dimension_numbers = #tpu.dot_dimension_numbers<[1], [0], [0], [1], [0, 0, 1, 1], [], []>} : vector<8x8xbf16>, vector<8x256xbf16>, vector<8x256xf32> -> vector<8x256xf32>
    %197 = arith.addf %189, %196 : vector<8x256xf32>
    %cst_118 = arith.constant 0.000000e+00 : f32
    %198 = vector.broadcast %cst_118 : f32 to vector<8x15xf32>
    %199 = vector.extract_strided_slice %181 {offsets = [0, 0], sizes = [8, 241], strides = [1, 1]} : vector<8x256xf32> to vector<8x241xf32>
    %200 = tpu.concatenate %198, %199 in 1 : vector<8x15xf32>, vector<8x241xf32> -> vector<8x256xf32>
    %201 = arith.mulf %200, %20 : vector<8x256xf32>
    %c2_119 = arith.constant 2 : index
    %c2_120 = arith.constant 2 : index
    %c0_121 = arith.constant 0 : index
    %c0_122 = arith.constant 0 : index
    %202 = vector.load %arg2[%c2_119, %c2_120, %c0_121, %c0_122] : memref<3x9x8x8xbf16, #tpu.memory_space<vmem>>, vector<1x1x8x8xbf16>
    %203 = vector.shape_cast %202 : vector<1x1x8x8xbf16> to vector<8x8xbf16>
    %204 = arith.truncf %201 : vector<8x256xf32> to vector<8x256xbf16>
    %cst_123 = arith.constant dense<0.000000e+00> : vector<8x256xf32>
    %205 = tpu.matmul %203, %204, %cst_123 {dimension_numbers = #tpu.dot_dimension_numbers<[1], [0], [0], [1], [0, 0, 1, 1], [], []>} : vector<8x8xbf16>, vector<8x256xbf16>, vector<8x256xf32> -> vector<8x256xf32>
    %206 = arith.addf %197, %205 : vector<8x256xf32>
    %cst_124 = arith.constant 0.000000e+00 : f32
    %207 = vector.broadcast %cst_124 : f32 to vector<8x1xf32>
    %208 = vector.extract_strided_slice %181 {offsets = [0, 0], sizes = [8, 255], strides = [1, 1]} : vector<8x256xf32> to vector<8x255xf32>
    %209 = tpu.concatenate %207, %208 in 1 : vector<8x1xf32>, vector<8x255xf32> -> vector<8x256xf32>
    %210 = arith.mulf %209, %24 : vector<8x256xf32>
    %c2_125 = arith.constant 2 : index
    %c3_126 = arith.constant 3 : index
    %c0_127 = arith.constant 0 : index
    %c0_128 = arith.constant 0 : index
    %211 = vector.load %arg2[%c2_125, %c3_126, %c0_127, %c0_128] : memref<3x9x8x8xbf16, #tpu.memory_space<vmem>>, vector<1x1x8x8xbf16>
    %212 = vector.shape_cast %211 : vector<1x1x8x8xbf16> to vector<8x8xbf16>
    %213 = arith.truncf %210 : vector<8x256xf32> to vector<8x256xbf16>
    %cst_129 = arith.constant dense<0.000000e+00> : vector<8x256xf32>
    %214 = tpu.matmul %212, %213, %cst_129 {dimension_numbers = #tpu.dot_dimension_numbers<[1], [0], [0], [1], [0, 0, 1, 1], [], []>} : vector<8x8xbf16>, vector<8x256xbf16>, vector<8x256xf32> -> vector<8x256xf32>
    %215 = arith.addf %206, %214 : vector<8x256xf32>
    %c2_130 = arith.constant 2 : index
    %c4_131 = arith.constant 4 : index
    %c0_132 = arith.constant 0 : index
    %c0_133 = arith.constant 0 : index
    %216 = vector.load %arg2[%c2_130, %c4_131, %c0_132, %c0_133] : memref<3x9x8x8xbf16, #tpu.memory_space<vmem>>, vector<1x1x8x8xbf16>
    %217 = vector.shape_cast %216 : vector<1x1x8x8xbf16> to vector<8x8xbf16>
    %218 = arith.truncf %181 : vector<8x256xf32> to vector<8x256xbf16>
    %cst_134 = arith.constant dense<0.000000e+00> : vector<8x256xf32>
    %219 = tpu.matmul %217, %218, %cst_134 {dimension_numbers = #tpu.dot_dimension_numbers<[1], [0], [0], [1], [0, 0, 1, 1], [], []>} : vector<8x8xbf16>, vector<8x256xbf16>, vector<8x256xf32> -> vector<8x256xf32>
    %220 = arith.addf %215, %219 : vector<8x256xf32>
    %cst_135 = arith.constant 0.000000e+00 : f32
    %221 = vector.broadcast %cst_135 : f32 to vector<8x1xf32>
    %222 = vector.extract_strided_slice %181 {offsets = [0, 1], sizes = [8, 255], strides = [1, 1]} : vector<8x256xf32> to vector<8x255xf32>
    %223 = tpu.concatenate %222, %221 in 1 : vector<8x255xf32>, vector<8x1xf32> -> vector<8x256xf32>
    %224 = arith.mulf %223, %20 : vector<8x256xf32>
    %c2_136 = arith.constant 2 : index
    %c5_137 = arith.constant 5 : index
    %c0_138 = arith.constant 0 : index
    %c0_139 = arith.constant 0 : index
    %225 = vector.load %arg2[%c2_136, %c5_137, %c0_138, %c0_139] : memref<3x9x8x8xbf16, #tpu.memory_space<vmem>>, vector<1x1x8x8xbf16>
    %226 = vector.shape_cast %225 : vector<1x1x8x8xbf16> to vector<8x8xbf16>
    %227 = arith.truncf %224 : vector<8x256xf32> to vector<8x256xbf16>
    %cst_140 = arith.constant dense<0.000000e+00> : vector<8x256xf32>
    %228 = tpu.matmul %226, %227, %cst_140 {dimension_numbers = #tpu.dot_dimension_numbers<[1], [0], [0], [1], [0, 0, 1, 1], [], []>} : vector<8x8xbf16>, vector<8x256xbf16>, vector<8x256xf32> -> vector<8x256xf32>
    %229 = arith.addf %220, %228 : vector<8x256xf32>
    %cst_141 = arith.constant 0.000000e+00 : f32
    %230 = vector.broadcast %cst_141 : f32 to vector<8x15xf32>
    %231 = vector.extract_strided_slice %181 {offsets = [0, 15], sizes = [8, 241], strides = [1, 1]} : vector<8x256xf32> to vector<8x241xf32>
    %232 = tpu.concatenate %231, %230 in 1 : vector<8x241xf32>, vector<8x15xf32> -> vector<8x256xf32>
    %233 = arith.mulf %232, %24 : vector<8x256xf32>
    %c2_142 = arith.constant 2 : index
    %c6_143 = arith.constant 6 : index
    %c0_144 = arith.constant 0 : index
    %c0_145 = arith.constant 0 : index
    %234 = vector.load %arg2[%c2_142, %c6_143, %c0_144, %c0_145] : memref<3x9x8x8xbf16, #tpu.memory_space<vmem>>, vector<1x1x8x8xbf16>
    %235 = vector.shape_cast %234 : vector<1x1x8x8xbf16> to vector<8x8xbf16>
    %236 = arith.truncf %233 : vector<8x256xf32> to vector<8x256xbf16>
    %cst_146 = arith.constant dense<0.000000e+00> : vector<8x256xf32>
    %237 = tpu.matmul %235, %236, %cst_146 {dimension_numbers = #tpu.dot_dimension_numbers<[1], [0], [0], [1], [0, 0, 1, 1], [], []>} : vector<8x8xbf16>, vector<8x256xbf16>, vector<8x256xf32> -> vector<8x256xf32>
    %238 = arith.addf %229, %237 : vector<8x256xf32>
    %cst_147 = arith.constant 0.000000e+00 : f32
    %239 = vector.broadcast %cst_147 : f32 to vector<8x16xf32>
    %240 = vector.extract_strided_slice %181 {offsets = [0, 16], sizes = [8, 240], strides = [1, 1]} : vector<8x256xf32> to vector<8x240xf32>
    %241 = tpu.concatenate %240, %239 in 1 : vector<8x240xf32>, vector<8x16xf32> -> vector<8x256xf32>
    %c2_148 = arith.constant 2 : index
    %c7_149 = arith.constant 7 : index
    %c0_150 = arith.constant 0 : index
    %c0_151 = arith.constant 0 : index
    %242 = vector.load %arg2[%c2_148, %c7_149, %c0_150, %c0_151] : memref<3x9x8x8xbf16, #tpu.memory_space<vmem>>, vector<1x1x8x8xbf16>
    %243 = vector.shape_cast %242 : vector<1x1x8x8xbf16> to vector<8x8xbf16>
    %244 = arith.truncf %241 : vector<8x256xf32> to vector<8x256xbf16>
    %cst_152 = arith.constant dense<0.000000e+00> : vector<8x256xf32>
    %245 = tpu.matmul %243, %244, %cst_152 {dimension_numbers = #tpu.dot_dimension_numbers<[1], [0], [0], [1], [0, 0, 1, 1], [], []>} : vector<8x8xbf16>, vector<8x256xbf16>, vector<8x256xf32> -> vector<8x256xf32>
    %246 = arith.addf %238, %245 : vector<8x256xf32>
    %cst_153 = arith.constant 0.000000e+00 : f32
    %247 = vector.broadcast %cst_153 : f32 to vector<8x17xf32>
    %248 = vector.extract_strided_slice %181 {offsets = [0, 17], sizes = [8, 239], strides = [1, 1]} : vector<8x256xf32> to vector<8x239xf32>
    %249 = tpu.concatenate %248, %247 in 1 : vector<8x239xf32>, vector<8x17xf32> -> vector<8x256xf32>
    %250 = arith.mulf %249, %20 : vector<8x256xf32>
    %c2_154 = arith.constant 2 : index
    %c8_155 = arith.constant 8 : index
    %c0_156 = arith.constant 0 : index
    %c0_157 = arith.constant 0 : index
    %251 = vector.load %arg2[%c2_154, %c8_155, %c0_156, %c0_157] : memref<3x9x8x8xbf16, #tpu.memory_space<vmem>>, vector<1x1x8x8xbf16>
    %252 = vector.shape_cast %251 : vector<1x1x8x8xbf16> to vector<8x8xbf16>
    %253 = arith.truncf %250 : vector<8x256xf32> to vector<8x256xbf16>
    %cst_158 = arith.constant dense<0.000000e+00> : vector<8x256xf32>
    %254 = tpu.matmul %252, %253, %cst_158 {dimension_numbers = #tpu.dot_dimension_numbers<[1], [0], [0], [1], [0, 0, 1, 1], [], []>} : vector<8x8xbf16>, vector<8x256xbf16>, vector<8x256xf32> -> vector<8x256xf32>
    %255 = arith.addf %246, %254 : vector<8x256xf32>
    %256 = arith.addf %181, %255 : vector<8x256xf32>
    %cst_159 = arith.constant 0.000000e+00 : f32
    %257 = vector.broadcast %cst_159 : f32 to vector<8x256xf32>
    %258 = arith.maximumf %256, %257 : vector<8x256xf32>
    %259 = arith.truncf %258 : vector<8x256xf32> to vector<8x256xbf16>
    %c0_160 = arith.constant 0 : index
    %c0_161 = arith.constant 0 : index
    %260 = vector.load %arg4[%c0_160, %c0_161] : memref<256x256xbf16, #tpu.memory_space<vmem>>, vector<256x256xbf16>
    %cst_162 = arith.constant dense<0.000000e+00> : vector<8x256xf32>
    %261 = tpu.matmul %259, %260, %cst_162 {dimension_numbers = #tpu.dot_dimension_numbers<[1], [0], [0], [1], [0, 0, 1, 1], [], []>} : vector<8x256xbf16>, vector<256x256xbf16>, vector<8x256xf32> -> vector<8x256xf32>
    %262 = tpu.iota {dimensions = array<i32: 1>} : vector<8x256xi32>
    %263 = tpu.iota {dimensions = array<i32: 0>} : vector<8x256xi32>
    %c32_i32 = arith.constant 32 : i32
    %264 = vector.broadcast %c32_i32 : i32 to vector<8x256xi32>
    %265 = arith.muli %263, %264 : vector<8x256xi32>
    %266 = arith.cmpi sge, %262, %265 : vector<8x256xi32>
    %c32_i32_163 = arith.constant 32 : i32
    %267 = vector.broadcast %c32_i32_163 : i32 to vector<8x256xi32>
    %268 = arith.muli %263, %267 : vector<8x256xi32>
    %c32_i32_164 = arith.constant 32 : i32
    %269 = vector.broadcast %c32_i32_164 : i32 to vector<8x256xi32>
    %270 = arith.addi %268, %269 : vector<8x256xi32>
    %271 = arith.cmpi slt, %262, %270 : vector<8x256xi32>
    %272 = arith.andi %266, %271 : vector<8x256xi1>
    %273 = arith.extui %272 : vector<8x256xi1> to vector<8x256xi32>
    %274 = arith.sitofp %273 : vector<8x256xi32> to vector<8x256xf32>
    %275 = arith.mulf %261, %274 : vector<8x256xf32>
    %cst_165 = arith.constant dense<0.000000e+00> : vector<256xf32>
    %276 = vector.multi_reduction <add>, %275, %cst_165 [0] : vector<8x256xf32> to vector<256xf32>
    %277 = vector.shape_cast %276 : vector<256xf32> to vector<1x256xf32>
    %278 = vector.extract_strided_slice %277 {offsets = [0, 0], sizes = [1, 128], strides = [1, 1]} : vector<1x256xf32> to vector<1x128xf32>
    %279 = vector.extract_strided_slice %277 {offsets = [0, 128], sizes = [1, 128], strides = [1, 1]} : vector<1x256xf32> to vector<1x128xf32>
    %280 = arith.addf %278, %279 : vector<1x128xf32>
    %281 = vector.extract_strided_slice %280 {offsets = [0, 0], sizes = [1, 64], strides = [1, 1]} : vector<1x128xf32> to vector<1x64xf32>
    %282 = vector.extract_strided_slice %280 {offsets = [0, 64], sizes = [1, 64], strides = [1, 1]} : vector<1x128xf32> to vector<1x64xf32>
    %283 = arith.addf %281, %282 : vector<1x64xf32>
    %284 = vector.extract_strided_slice %283 {offsets = [0, 0], sizes = [1, 32], strides = [1, 1]} : vector<1x64xf32> to vector<1x32xf32>
    %285 = vector.extract_strided_slice %283 {offsets = [0, 32], sizes = [1, 32], strides = [1, 1]} : vector<1x64xf32> to vector<1x32xf32>
    %286 = arith.addf %284, %285 : vector<1x32xf32>
    %c0_166 = arith.constant 0 : index
    %c0_167 = arith.constant 0 : index
    %287 = vector.load %arg5[%c0_166, %c0_167] : memref<1x32xf32, #tpu.memory_space<vmem>>, vector<1x32xf32>
    %288 = arith.addf %286, %287 : vector<1x32xf32>
    %cst_168 = arith.constant 0.000000e+00 : f32
    %289 = vector.broadcast %cst_168 : f32 to vector<1x32xf32>
    %290 = arith.maximumf %288, %289 : vector<1x32xf32>
    %c0_169 = arith.constant 0 : index
    %c0_170 = arith.constant 0 : index
    %c0_171 = arith.constant 0 : index
    %291 = vector.load %arg6[%c0_169, %c0_170, %c0_171] : memref<1x1x32xf32, #tpu.memory_space<vmem>>, vector<1x1x32xf32>
    %292 = vector.shape_cast %291 : vector<1x1x32xf32> to vector<1x32xf32>
    %293 = vector.shape_cast %290 : vector<1x32xf32> to vector<1x1x32xf32>
    tpu.vector_store %arg6[%c0_169, %c0_170, %c0_171], %293 {strides = array<i32>} : memref<1x1x32xf32, #tpu.memory_space<vmem>>, vector<1x1x32xf32>,
    return
  }
  func.func @transform_0(%arg0: i32) -> (i32, i32) {
    %c0_i32 = arith.constant 0 : i32
    %c0_i32_0 = arith.constant 0 : i32
    return %c0_i32, %arg0 : i32, i32
  }
  func.func @transform_1(%arg0: i32) -> (i32, i32, i32, i32) {
    %c0_i32 = arith.constant 0 : i32
    %c0_i32_0 = arith.constant 0 : i32
    %c0_i32_1 = arith.constant 0 : i32
    %c0_i32_2 = arith.constant 0 : i32
    %c0_i32_3 = arith.constant 0 : i32
    return %c0_i32, %c0_i32_0, %c0_i32_1, %c0_i32_2 : i32, i32, i32, i32
  }
  func.func @transform_2(%arg0: i32) -> (i32, i32) {
    %c0_i32 = arith.constant 0 : i32
    %c0_i32_0 = arith.constant 0 : i32
    %c0_i32_1 = arith.constant 0 : i32
    return %c0_i32, %c0_i32_0 : i32, i32
  }
  func.func @transform_3(%arg0: i32) -> (i32, i32) {
    %c0_i32 = arith.constant 0 : i32
    %c0_i32_0 = arith.constant 0 : i32
    %c0_i32_1 = arith.constant 0 : i32
    return %c0_i32, %c0_i32_0 : i32, i32
  }
  func.func @transform_4(%arg0: i32) -> (i32, i32) {
    %c0_i32 = arith.constant 0 : i32
    %c0_i32_0 = arith.constant 0 : i32
    %c0_i32_1 = arith.constant 0 : i32
    return %c0_i32, %c0_i32_0 : i32, i32
  }
  func.func @transform_5(%arg0: i32) -> (i32, i32, i32) {
    %c0_i32 = arith.constant 0 : i32
    %c0_i32_0 = arith.constant 0 : i32
    %c0_i32_1 = arith.constant 0 : i32
    return %arg0, %c0_i32, %c0_i32_0 : i32, i32, i32
  }
}

</mosaic_0001>

<bundles_post_ra>
// kernel: tpu_custom_call.1
= control target key start
LH: loop header
LB: loop body
LE: loop exit
PB: predicated region body
PF: predicated region fallthrough
CT: control target
= control target key end

     0   :  { %10 = vsyncpa [#allocation3], 0  ;;  %s3368_s0 = inlined_call_operand.vmem [shape: f32[8,512], index: 0, kind: input, shape index: {}]   ;;  %s3369_s1 = inlined_call_operand.vmem [shape: bf16[3,9,8,8], index: 1, kind: input, shape index: {}]   ;;  %s3370_s2 = inlined_call_operand.vmem [shape: f32[8,1], index: 2, kind: input, shape index: {}]   ;;  %s3371_s3 = inlined_call_operand.hbm [shape: bf16[256,256], index: 3, kind: input, shape index: {}]   ;;  %s3372_s4 = inlined_call_operand.vmem [shape: f32[1,32], index: 4, kind: input, shape index: {}]   ;;  %s3373_s5 = inlined_call_operand.hbm [shape: f32[2,1,32], index: 5, kind: output, shape index: {}]  }
   0x1   :  { %11 = vsyncpa [#allocation4], 0 }
   0x2   :  { %13 = vsyncpa [#allocation4 + $0x1], 0  ;;  %s2815_s18 = smov 0   ;;  %s2817_s19 = smov 0  }
   0x3   :  { %s2819_s20 = smov 0   ;;  %s2821_s21 = smov 0  }
   0x4 LB: > { %s2836_s22 = sadd.s32 4294967295, %s2767_s21   ;;  %s2401_s23 = sadd.s32 4294967294, %s2767_s21   ;;  %s2767_s21 = sphi %s2821_s21, %s3389_s21   ;;  %s2763_s20 = sphi %s2819_s20, %s3388_s20   ;;  %s2759_s19 = sphi %s2817_s19, %s3387_s19   ;;  %s2755_s18 = sphi %s2815_s18, %s3386_s18  }
   0x5   : > { %s2840_s24 = sadd.s32 1, %s2767_s21   ;;  %s136_s25 = sadd.s32 1, %s2763_s20 }
   0x6   : > { %s133_s26 = ssub.s32 %s2767_s21, %s2840_s24  ;;  %p146_p0 = scmp.ne.s32.totalorder %s2763_s20, %s2759_s19 }
   0x7   : > { %p134_p1 = scmp.eq.s32.totalorder %s133_s26, 0  ;;  %p147_p2 = scmp.eq.s32.totalorder %s2836_s22, 1 }
   0x8   : > { %p152_p3 = scmp.ne.s32.totalorder %s2759_s19, %s2755_s18  ;;  %p153_p4 = scmp.eq.s32.totalorder %s2401_s23, 1 }
   0x9   : > { %s2851_s27 = scalar_select %p134_p1, %s2763_s20, %s136_s25  }
   0xa   : > { %p2853_p5 = por %p147_p2, %p146_p0  ;;  %p2857_p6 = por %p153_p4, %p152_p3 }
   0xb   : > { %p2402_p7 = scmp.ge.s32.totalorder %s2767_s21, 1  ;;  %p160_p8 = scmp.lt.s32.totalorder %s2767_s21, 3 }
   0xc   : > { %s3377_s28 = scalar_select %p2853_p5, 1, 0 }
   0xd   : > { %s3378_s29 = scalar_select %p2857_p6, 1, 0 }
   0xe   : > { %p3374_p9 = scmp.eq.s32.totalorder %s2836_s22, 0  ;;  %p2864_p10 = pnand %p2402_p7, %p160_p8 }
   0xf   : > { %s2769_s6 = smov [#allocation2]   ;;  %s2673_s11 = scalar_lea.hbm %s3371_s3, 4096 }
  0x10   : > { %s3379_s30 = scalar_select %p2864_p10, 1, 0 }
  0x11   : > { %s178_s7 = sshll.u32 %s2769_s6, 4  ;;  %p2536_p11 = pneg %p2864_p10  ;;  %s179_s7 = int_to_ptr.vmem [resolvable:$true] %s178_s7 }
  0x12   : > { %p2674_p13 = scmp.ne.s32.totalorder %s3371_s3, %s2673_s11  ;;  %p2680_p3 = scmp.lt.u32.totalorder %s2673_s11, %s3371_s3 }
  0x13   : > { %p2872_p12 = pnand %p3374_p9, %p2536_p11 }
  0x15   : > { %p2675_p0 = pneg %p2872_p12 }
  0x17   : > { %p2676_p1 = pnand %p2675_p0, %p2674_p13 }
  0x19   : > { %p2677_p2 = pneg %p2676_p1 }
  0x1b   : > { %p2682_p4 = pnand %p2680_p3, %p2677_p2 }
  0x1d   : > { %2685 = shalt.err (!%p2682_p4)
}
  0x1e   : > { %s2686_s16 = scalar_lea.vmem %s179_s7, 4096  ;;  %p2694_p9 = scmp.lt.s32.totalorder %s179_s7, %s179_s7 }
  0x1f   : > { %p2687_p7 = scmp.ne.s32.totalorder %s179_s7, %s2686_s16  ;;  %p2695_p6 = scmp.lt.s32.totalorder %s2686_s16, %s2686_s16 }
  0x21   : > { %p2689_p8 = pnand %p2687_p7, %p2675_p0  ;;  %p2696_p5 = por %p2695_p6, %p2694_p9 }
  0x23   : > { %p2690_p11 = pneg %p2689_p8 }
  0x25   : > { %p2697_p10 = pnand %p2696_p5, %p2690_p11 }
  0x27   : > { %2700 = shalt.err (!%p2697_p10)
}
  0x28   : > { %s2770_s17 = smov 128   ;;  %s2771_s23 = smov 8  }
  0x29   : > { %2539 = dma.hbm_to_vmem [thread:$0]  (!%p2872_p12), %s3371_s3, 4096, %s179_s7, [#allocation3], %s2770_s17, %s2770_s17, %s2771_s23  }
  0x2a   : > { %p3381_p13 = scmp.ne.s32.totalorder %s3379_s30, 0 }
  0x2b   : > { %p3382_p1 = scmp.eq.s32.totalorder (!%p3381_p13), %s2836_s22, 0 }
  0x2c   : > { %206 = sbr.rel (%p3381_p13) target bundleno = 1698 (0x6a2), region = 40 }
  0x33   : > { %2746 = dma.done.wait (%p3382_p1), [#allocation3], 4096   ;;  %p3383_p0 = pmov %p3382_p1 }
  0x34   : > { %s2407_s6 = sshll.u32 %s2836_s22, 1  ;;  %v2772_v0 = vmov 0   ;;  %s2773_s10 = smov 17   ;;  %v868_v4 = vld [vmem:[%s3370_s2] sm:$0xff]  ;;  %v240_v5 = vlaneseq  ;;  %vm301_vm0 = vcmask 130048   ;;  %vm314_vm3 = vcmask 1043456  }
  0x35   : > { %2748 = vsyncadd (%p3383_p0), [#allocation3], 4294963200  ;;  %p234_p5 = scmp.lt.s32.totalorder %s2407_s6, 3  ;;  %353 = vmatprep.mubr.bf16.mxu0 %v2772_v0  ;;  %790 = vmatprep.mubr.bf16.mxu1 %v2772_v0  ;;  %s2774_s11 = smov 16   ;;  %vm287_vm4 = vcmask 138240   ;;  %vm416_vm6 = vcmask 121856  }
  0x36   : > { %2604 = vset.pattern.permute.xlu0 %v2772_v0  ;;  %s2775_s12 = smov 15   ;;  %s2776_s13 = smov 1   ;;  %v2941_v6 = vand.u32 127, %v240_v5  ;;  %v2781_v17 = vmov 0.0   ;;  %v2413_v31 = vld [vmem:[%s3369_s1 + $0x4] sm:$0xf] }
  0x37   : > { %s3391_s6 = smov (!%p234_p5, %s2407_s6), 3  ;;  %s2777_s14 = smov 127   ;;  %vm310_vm8 = vcmask 64512   ;;  %vm483_vm9 = vcmask 7168   ;;  %v294_v48 = vld [vmem:[%s3369_s1] sm:$0xf] }
  0x38   : > { %s2408_s9 = sshll.u32 %s3391_s6, 3  ;;  %s2778_s15 = smov 113   ;;  %v2944_v7 = vadd.s32 128, %v2941_v6  ;;  %v247_v8 = vand.u32 15, %v2941_v6  ;;  %vm740_vm10 = vcmask 916480   ;;  %vm606_vm11 = vcmask 1039360  }
  0x39   : > { %s237_s30 = scalar_lea.vmem %s3368_s0, %s2408_s9  ;;  %s2779_s16 = smov 112   ;;  %v2418_v60 = vld [vmem:[%s3369_s1 + $0x8] sm:$0xf]  ;;  %vm673_vm12 = vcmask 924672   ;;  %vm805_vm13 = vcmask 908288  }
  0x3a   : > { %v2905_v1 = vld [vmem:[%s237_s30] sm:$0xff]  ;;  %v2907_v2 = vld [vmem:[%s237_s30 + $0x8] sm:$0xff]  ;;  %s2780_s17 = smov 111   ;;  %v254_v9 = vand.u32 15, %v2944_v7  ;;  %vm273_vm1 = vcmp.ge.s32.totalorder %v247_v8, 1  ;;  %vm267_vm5 = vcmp.lt.s32.totalorder %v247_v8, 15 }
  0x3b   : > { %v2594_v3 = vpack.i.bf16 %v2907_v2, %v2905_v1  ;;  %285 = vrot.lane.b32.xlu1 %v2907_v2, %s2773_s10  ;;  %v2951_v18 = vsel %vm273_vm1, 1.0, %v2781_v17  ;;  %v2959_v25 = vsel %vm267_vm5, 1.0, %v2781_v17  ;;  %v549_v63 = vpack.c.bf16 %v2907_v2, %v2907_v2  ;;  %v2433_v8 = vld [vmem:[%s3369_s1 + $0x1c] sm:$0xf]  ;;  %p3384_p9 = scmp.ne.s32.totalorder %s3377_s28, 0 }
  0x3c   : > { %vm274_vm2 = vcmp.ge.s32.totalorder %v254_v9, 1  ;;  %vm268_vm7 = vcmp.lt.s32.totalorder %v254_v9, 15 }
  0x3d   : > { %2595 = vrot.lane.b32.xlu0 %v2594_v3, %s2774_s11  ;;  %v2954_v19 = vsel %vm274_vm2, 1.0, %v2781_v17  ;;  %v2970_v32 = vsel %vm268_vm7, 1.0, %v2781_v17 }
  0x3f   : > { %412 = vrot.lane.b32.xlu1 %v2905_v1, %s2775_s12 }
  0x41   : > { %283 = vrot.lane.b32.xlu0 %v2905_v1, %s2773_s10 }
  0x43   : > { %479 = vrot.lane.b32.xlu1 %v2905_v1, %s2776_s13 }
  0x45   : > { %414 = vrot.lane.b32.xlu0 %v2907_v2, %s2775_s12 }
  0x47   : > { %602 = vrot.lane.b32.xlu1 %v2905_v1, %s2777_s14 }
  0x49   : > { %481 = vrot.lane.b32.xlu0 %v2907_v2, %s2776_s13 }
  0x4b   : > { %669 = vrot.lane.b32.xlu1 %v2905_v1, %s2778_s15 }
  0x4d   : > { %604 = vrot.lane.b32.xlu0 %v2907_v2, %s2777_s14 }
  0x4f   : > { %2600 = vrot.lane.b32.xlu1 %v2594_v3, %s2779_s16 }
  0x51   : > { %671 = vrot.lane.b32.xlu0 %v2907_v2, %s2778_s15 }
  0x53   : > { %803 = vrot.lane.b32.xlu1 %v2907_v2, %s2780_s17  ;;  %v548_v2 = vpack.c.bf16 %v2905_v1, %v2905_v1 }
  0x55   : > { %801 = vrot.lane.b32.xlu0 %v2905_v1, %s2780_s17 }
  0x59   : > { %871 = vperm.xlu0 %2604, %v868_v4  }
  0xad   : > { %v286_v10 = vpop.permute.xlu1 %285 }
  0xaf   : > { %v2596_v11 = vpop.permute.xlu0 %2595 }
  0xb0   : > { %v2598_v12 = vunpack.i.h.bf16 %v2596_v11  ;;  %v2597_v13 = vunpack.i.l.bf16 %v2596_v11 }
  0xb1   : > { %v413_v14 = vpop.permute.xlu1 %412 }
  0xb2   : > { %v302_v15 = vsel %vm301_vm0, %v2597_v13, %v2598_v12  ;;  %v305_v16 = vsel %vm301_vm0, 0.0, %v2597_v13  ;;  %v420_v26 = vsel %vm416_vm6, 0.0, %v413_v14  ;;  %v2421_v12 = vld [vmem:[%s3369_s1 + $0xc] sm:$0xf]  ;;  %v554_v13 = vsel %vm314_vm3, %v548_v2, 0 }
  0xb3   : > { %v309_v20 = vpack.c.bf16 %v302_v15, %v302_v15  ;;  %v308_v21 = vpack.c.bf16 %v305_v16, %v305_v16  ;;  %v284_v22 = vpop.permute.xlu0 %283  ;;  %v421_v35 = vmul.f32 %v2959_v25, %v420_v26 }
  0xb4   : > { %v288_v23 = vsel %vm287_vm4, %v284_v22, %v286_v10  ;;  %v291_v24 = vsel %vm287_vm4, 0.0, %v284_v22 }
  0xb5   : > { %2414 = vmatprep.subr.msk.bf16.mxu0 %vm314_vm3, %v309_v20  ;;  %v316_v27 = vsel %vm314_vm3, %v308_v21, 0  ;;  %v292_v28 = vmul.f32 %v2951_v18, %v291_v24  ;;  %v293_v29 = vmul.f32 %v2954_v19, %v288_v23  ;;  %v480_v30 = vpop.permute.xlu1 %479  ;;  %v425_v41 = vpack.c.bf16 %v421_v35, %v421_v35  ;;  %v2424_v23 = vld [vmem:[%s3369_s1 + $0x10] sm:$0xf] }
  0xb6   : > { %322 = vmatpush1.bf16.msra.mxu0 %v316_v27  ;;  %v487_v44 = vsel %vm483_vm9, 0.0, %v480_v30 }
  0xb7   : > { %v295_v33 = vpack.c.bf16 %v292_v28, %v292_v28  ;;  %v296_v34 = vpack.c.bf16 %v293_v29, %v293_v29  ;;  %v415_v36 = vpop.permute.xlu0 %414  ;;  %v431_v49 = vsel %vm314_vm3, %v425_v41, 0  ;;  %v488_v50 = vmul.f32 %v2951_v18, %v487_v44  ;;  %v2436_v41 = vld [vmem:[%s3369_s1 + $0x20] sm:$0xf] }
  0xb8   : > { %v417_v37 = vsel %vm416_vm6, %v413_v14, %v415_v36 }
  0xb9   : > { %2415 = vmatmul.mubr.msk.bf16.vlgmr.msra.gmra.mrb[0].mxu0 %vm310_vm8, %v2413_v31  ;;  %2416 = vmatprep.subr.msk.bf16.mxu0 %vm314_vm3, %v296_v34  ;;  %v366_v38 = vsel %vm314_vm3, %v295_v33, 0  ;;  %v422_v39 = vmul.f32 %v2970_v32, %v417_v37  ;;  %v603_v40 = vpop.permute.xlu1 %602  ;;  %v492_v55 = vpack.c.bf16 %v488_v50, %v488_v50  ;;  %v2427_v34 = vld [vmem:[%s3369_s1 + $0x14] sm:$0xf] }
  0xba   : > { %372 = vmatpush1.bf16.msra.mxu0 %v366_v38  ;;  %403 = vmatprep.mubr.bf16.mxu0 %v2772_v0 }
  0xbb   : > { %v426_v42 = vpack.c.bf16 %v422_v39, %v422_v39  ;;  %v482_v43 = vpop.permute.xlu0 %481  ;;  %v498_v62 = vsel %vm314_vm3, %v492_v55, 0  ;;  %v2430_v39 = vld [vmem:[%s3369_s1 + $0x18] sm:$0xf] }
  0xbc   : > { %v484_v45 = vsel %vm483_vm9, %v480_v30, %v482_v43 }
  0xbd   : > { %2419 = vmatprep.subr.msk.bf16.mxu0 %vm314_vm3, %v426_v42  ;;  %v489_v46 = vmul.f32 %v2954_v19, %v484_v45  ;;  %v670_v47 = vpop.permute.xlu1 %669 }
  0xbf   : > { %v493_v51 = vpack.c.bf16 %v489_v46, %v489_v46  ;;  %v605_v58 = vpop.permute.xlu0 %604 }
  0xc0   : > { %v610_v3 = vsel %vm606_vm11, %v605_v58, 0.0  ;;  %v607_v10 = vsel %vm606_vm11, %v603_v40, %v605_v58 }
  0xc1   : > { %2417 = vmatmul.mubr.msk.bf16.vlgmr.msra.gmra.mrb[4].mxu0 %vm310_vm8, %v294_v48  ;;  %v2601_v52 = vpop.permute.xlu1 %2600  ;;  %v612_v9 = vmul.f32 %v2970_v32, %v610_v3  ;;  %v611_v14 = vmul.f32 %v2959_v25, %v607_v10 }
  0xc2   : > { %437 = vmatpush1.bf16.msra.mxu0 %v431_v49  ;;  %468 = vmatprep.mubr.bf16.mxu0 %v2772_v0  ;;  %v2603_v53 = vunpack.i.h.bf16 %v2601_v52  ;;  %v2602_v54 = vunpack.i.l.bf16 %v2601_v52 }
  0xc3   : > { %2422 = vmatprep.subr.msk.bf16.mxu0 %vm314_vm3, %v493_v51  ;;  %v672_v11 = vpop.permute.xlu0 %671  ;;  %v616_v15 = vpack.c.bf16 %v612_v9, %v612_v9  ;;  %v615_v16 = vpack.c.bf16 %v611_v14, %v611_v14 }
  0xc4   : > { %v744_v56 = vsel %vm740_vm10, %v2603_v53, 0.0  ;;  %v741_v57 = vsel %vm740_vm10, %v2602_v54, %v2603_v53  ;;  %v677_v1 = vsel %vm673_vm12, %v672_v11, 0.0  ;;  %v674_v21 = vsel %vm673_vm12, %v670_v47, %v672_v11 }
  0xc5   : > { %v748_v59 = vpack.c.bf16 %v744_v56, %v744_v56  ;;  %v747_v61 = vpack.c.bf16 %v741_v57, %v741_v57  ;;  %v679_v20 = vmul.f32 %v2954_v19, %v677_v1  ;;  %v804_v22 = vpop.permute.xlu1 %803  ;;  %v621_v24 = vsel %vm314_vm3, %v615_v16, 0 }
  0xc6   : > { %v678_v26 = vmul.f32 %v2951_v18, %v674_v21  ;;  %v809_v28 = vsel %vm805_vm13, %v804_v22, 0.0 }
  0xc7   : > { %2434 = vmatprep.subr.msk.bf16.mxu1 %vm314_vm3, %v748_v59  ;;  %v753_v4 = vsel %vm314_vm3, %v747_v61, 0  ;;  %v683_v27 = vpack.c.bf16 %v679_v20, %v679_v20  ;;  %v802_v29 = vpop.permute.xlu0 %801  ;;  %v811_v31 = vmul.f32 %v2970_v32, %v809_v28 }
  0xc8   : > { %759 = vmatpush1.bf16.msra.mxu1 %v753_v4  ;;  %v682_v30 = vpack.c.bf16 %v678_v26, %v678_v26  ;;  %v806_v33 = vsel %vm805_vm13, %v802_v29, %v804_v22 }
  0xc9   : > { %2420 = vmatmul.mubr.msk.bf16.vlgmr.msra.gmra.mrb[8].mxu0 %vm310_vm8, %v2418_v60  ;;  %v815_v36 = vpack.c.bf16 %v811_v31, %v811_v31  ;;  %v810_v37 = vmul.f32 %v2959_v25, %v806_v33 }
  0xca   : > { %504 = vmatpush1.bf16.msra.mxu0 %v498_v62  ;;  %535 = vmatprep.mubr.bf16.mxu0 %v2772_v0  ;;  %v688_v35 = vsel %vm314_vm3, %v682_v30, 0 }
  0xcb   : > { %2425 = vmatprep.subr.msk.bf16.mxu0 %vm314_vm3, %v549_v63  ;;  %2435 = vmatmul.mubr.msk.bf16.vlgmr.msra.gmra.mrb[0].mxu1 %vm310_vm8, %v2433_v8  ;;  %v814_v38 = vpack.c.bf16 %v810_v37, %v810_v37 }
  0xcc   : > { %947 = vmatprep.mubr.bf16.mxu1 %v2772_v0 }
  0xcd   : > { %v820_v40 = vsel %vm314_vm3, %v814_v38, 0 }
  0xd1   : > { %2423 = vmatmul.mubr.msk.bf16.vlgmr.msra.gmra.mrb[12].mxu0 %vm310_vm8, %v2421_v12 }
  0xd2   : > { %560 = vmatpush1.bf16.msra.mxu0 %v554_v13  ;;  %591 = vmatprep.mubr.bf16.mxu0 %v2772_v0 }
  0xd3   : > { %2428 = vmatprep.subr.msk.bf16.mxu0 %vm314_vm3, %v616_v15 }
  0xd9   : > { %2426 = vmatmul.mubr.msk.bf16.vlgmr.msra.gmra.mrb[16].mxu0 %vm310_vm8, %v2424_v23 }
  0xda   : > { %627 = vmatpush1.bf16.msra.mxu0 %v621_v24  ;;  %658 = vmatprep.mubr.bf16.mxu0 %v2772_v0 }
  0xdb   : > { %2431 = vmatprep.subr.msk.bf16.mxu0 %vm314_vm3, %v683_v27 }
  0xe1   : > { %2429 = vmatmul.mubr.msk.bf16.vlgmr.msra.gmra.mrb[20].mxu0 %vm310_vm8, %v2427_v34  ;;  %v872_v34 = vpop.permute.xlu0 %871 }
  0xe2   : > { %694 = vmatpush1.bf16.msra.mxu0 %v688_v35  ;;  %725 = vmatprep.mubr.bf16.mxu0 %v2772_v0 }
  0xe3   : > { %2437 = vmatprep.subr.msk.bf16.mxu0 %vm314_vm3, %v815_v36 }
  0xe9   : > { %2432 = vmatmul.mubr.msk.bf16.vlgmr.msra.gmra.mrb[24].mxu0 %vm310_vm8, %v2430_v39 }
  0xea   : > { %826 = vmatpush1.bf16.msra.mxu0 %v820_v40  ;;  %857 = vmatprep.mubr.bf16.mxu0 %v2772_v0 }
  0xf1   : > { %2438 = vmatmul.mubr.msk.bf16.vlgmr.msra.gmra.mrb[28].mxu0 %vm310_vm8, %v2436_v41 }
  0xf2   : > { %997 = vmatprep.mubr.bf16.mxu0 %v2772_v0 }
 0x18c   : > { %v355_v42 = vpop.f32.mrb[0].mxu0 }
 0x18d   : > { %v357_v43 = vpop.f32.mrb[1].mxu0 }
 0x18e   : > { %v359_v44 = vpop.f32.mrb[2].mxu0 }
 0x18f   : > { %v360_v45 = vpop.f32.mrb[3].mxu0 }
 0x194   : > { %v405_v46 = vpop.f32.mrb[4].mxu0 }
 0x195   : > { %v406_v47 = vadd.f32 %v405_v46, %v355_v42  ;;  %v407_v48 = vpop.f32.mrb[5].mxu0 }
 0x196   : > { %v408_v49 = vadd.f32 %v407_v48, %v357_v43  ;;  %v409_v50 = vpop.f32.mrb[6].mxu0 }
 0x197   : > { %v410_v51 = vpop.f32.mrb[7].mxu0 }
 0x19c   : > { %v470_v52 = vpop.f32.mrb[8].mxu0 }
 0x19d   : > { %v477_v53 = vadd.f32 %v470_v52, %v406_v47  ;;  %v472_v54 = vpop.f32.mrb[9].mxu0 }
 0x19e   : > { %v478_v55 = vadd.f32 %v472_v54, %v408_v49  ;;  %v474_v56 = vpop.f32.mrb[10].mxu0  ;;  %v792_v58 = vpop.f32.mrb[0].mxu1 }
 0x19f   : > { %v475_v57 = vpop.f32.mrb[11].mxu0  ;;  %v794_v59 = vpop.f32.mrb[1].mxu1 }
 0x1a0   : > { %v796_v60 = vpop.f32.mrb[2].mxu1 }
 0x1a1   : > { %v797_v61 = vpop.f32.mrb[3].mxu1 }
 0x1a2   : > { %v2440_v61 = vld [vmem:[%s3369_s1 + $0x28] sm:$0xf] }
 0x1a4   : > { %v537_v62 = vpop.f32.mrb[12].mxu0 }
 0x1a5   : > { %v544_v63 = vadd.f32 %v537_v62, %v477_v53  ;;  %v539_v3 = vpop.f32.mrb[13].mxu0 }
 0x1a6   : > { %v545_v4 = vadd.f32 %v539_v3, %v478_v55  ;;  %v541_v8 = vpop.f32.mrb[14].mxu0 }
 0x1a7   : > { %v542_v2 = vpop.f32.mrb[15].mxu0 }
 0x1ac   : > { %v593_v9 = vpop.f32.mrb[16].mxu0 }
 0x1ad   : > { %v600_v10 = vadd.f32 %v593_v9, %v544_v63  ;;  %v595_v11 = vpop.f32.mrb[17].mxu0 }
 0x1ae   : > { %v601_v12 = vadd.f32 %v595_v11, %v545_v4  ;;  %v597_v13 = vpop.f32.mrb[18].mxu0 }
 0x1af   : > { %v598_v14 = vpop.f32.mrb[19].mxu0  ;;  %v2439_v13 = vld [vmem:[%s3369_s1 + $0x24] sm:$0xf] }
 0x1b4   : > { %v660_v15 = vpop.f32.mrb[20].mxu0 }
 0x1b5   : > { %v667_v1 = vadd.f32 %v660_v15, %v600_v10  ;;  %v662_v16 = vpop.f32.mrb[21].mxu0 }
 0x1b6   : > { %v668_v20 = vadd.f32 %v662_v16, %v601_v12  ;;  %v664_v21 = vpop.f32.mrb[22].mxu0 }
 0x1b7   : > { %v665_v22 = vpop.f32.mrb[23].mxu0 }
 0x1bc   : > { %v727_v23 = vpop.f32.mrb[24].mxu0 }
 0x1bd   : > { %v734_v24 = vadd.f32 %v727_v23, %v667_v1  ;;  %v729_v26 = vpop.f32.mrb[25].mxu0 }
 0x1be   : > { %v735_v27 = vadd.f32 %v729_v26, %v668_v20  ;;  %v731_v28 = vpop.f32.mrb[26].mxu0 }
 0x1bf   : > { %v799_v29 = vadd.f32 %v792_v58, %v734_v24  ;;  %v732_v30 = vpop.f32.mrb[27].mxu0 }
 0x1c0   : > { %v800_v31 = vadd.f32 %v794_v59, %v735_v27  ;;  %v2445_v30 = vld [vmem:[%s3369_s1 + $0x2c] sm:$0xf] }
 0x1c4   : > { %v859_v33 = vpop.f32.mrb[28].mxu0 }
 0x1c5   : > { %v866_v35 = vadd.f32 %v859_v33, %v799_v29  ;;  %v861_v36 = vpop.f32.mrb[29].mxu0 }
 0x1c6   : > { %v867_v37 = vadd.f32 %v861_v36, %v800_v31  ;;  %v863_v38 = vpop.f32.mrb[30].mxu0 }
 0x1c7   : > { %v874_v39 = vadd.f32 %v872_v34, %v866_v35  ;;  %v864_v40 = vpop.f32.mrb[31].mxu0 }
 0x1c8   : > { %v875_v41 = vadd.f32 %v872_v34, %v867_v37 }
 0x1c9   : > { %v3055_v42 = vmax.f32 %v874_v39, 0.0 }
 0x1ca   : > { %v3057_v43 = vmax.f32 %v875_v41, 0.0 }
 0x1cb   : > { %v1140_v22 = vpack.c.bf16 %v3055_v42, %v3055_v42 }
 0x1cc   : > { %882 = vrot.lane.b32.xlu0 %v3057_v43, %s2773_s10  ;;  %v2605_v44 = vpack.i.bf16 %v3057_v43, %v3055_v42  ;;  %v1141_v21 = vpack.c.bf16 %v3057_v43, %v3057_v43 }
 0x1cd   : > { %v1146_v37 = vsel %vm314_vm3, %v1140_v22, 0 }
 0x1ce   : > { %2606 = vrot.lane.b32.xlu1 %v2605_v44, %s2774_s11 }
 0x1d0   : > { %1008 = vrot.lane.b32.xlu0 %v3057_v43, %s2775_s12 }
 0x1d2   : > { %880 = vrot.lane.b32.xlu1 %v3055_v42, %s2773_s10 }
 0x1d4   : > { %1074 = vrot.lane.b32.xlu0 %v3057_v43, %s2776_s13 }
 0x1d6   : > { %1006 = vrot.lane.b32.xlu1 %v3055_v42, %s2775_s12 }
 0x1d8   : > { %1196 = vrot.lane.b32.xlu0 %v3057_v43, %s2777_s14 }
 0x1da   : > { %1072 = vrot.lane.b32.xlu1 %v3055_v42, %s2776_s13 }
 0x1dc   : > { %1262 = vrot.lane.b32.xlu0 %v3057_v43, %s2778_s15 }
 0x1de   : > { %1194 = vrot.lane.b32.xlu1 %v3055_v42, %s2777_s14 }
 0x1e0   : > { %1390 = vrot.lane.b32.xlu0 %v3055_v42, %s2780_s17 }
 0x1e2   : > { %1260 = vrot.lane.b32.xlu1 %v3055_v42, %s2778_s15 }
 0x1e6   : > { %2611 = vrot.lane.b32.xlu1 %v2605_v44, %s2779_s16  ;;  %v2448_v44 = vld [vmem:[%s3369_s1 + $0x30] sm:$0xf] }
 0x1ea   : > { %1392 = vrot.lane.b32.xlu1 %v3057_v43, %s2780_s17 }
 0x23e   : > { %v883_v45 = vpop.permute.xlu0 %882 }
 0x240   : > { %v2607_v46 = vpop.permute.xlu1 %2606 }
 0x241   : > { %v2609_v47 = vunpack.i.h.bf16 %v2607_v46  ;;  %v2608_v48 = vunpack.i.l.bf16 %v2607_v46 }
 0x242   : > { %v1009_v49 = vpop.permute.xlu0 %1008 }
 0x243   : > { %v898_v50 = vsel %vm301_vm0, %v2608_v48, %v2609_v47  ;;  %v901_v51 = vsel %vm301_vm0, 0.0, %v2608_v48 }
 0x244   : > { %v904_v52 = vpack.c.bf16 %v901_v51, %v901_v51  ;;  %v905_v53 = vpack.c.bf16 %v898_v50, %v898_v50  ;;  %v881_v54 = vpop.permute.xlu1 %880  ;;  %v2451_v50 = vld [vmem:[%s3369_s1 + $0x34] sm:$0xf] }
 0x245   : > { %v884_v55 = vsel %vm287_vm4, %v881_v54, %v883_v45  ;;  %v887_v56 = vsel %vm287_vm4, 0.0, %v881_v54 }
 0x246   : > { %v888_v57 = vmul.f32 %v2951_v18, %v887_v56  ;;  %v889_v58 = vmul.f32 %v2954_v19, %v884_v55  ;;  %v1075_v59 = vpop.permute.xlu0 %1074  ;;  %2441 = vmatprep.subr.msk.bf16.mxu1 %vm314_vm3, %v905_v53  ;;  %v910_v60 = vsel %vm314_vm3, %v904_v52, 0 }
 0x247   : > { %916 = vmatpush1.bf16.msra.mxu1 %v910_v60 }
 0x248   : > { %v892_v62 = vpack.c.bf16 %v888_v57, %v888_v57  ;;  %v893_v63 = vpack.c.bf16 %v889_v58, %v889_v58  ;;  %v1007_v3 = vpop.permute.xlu1 %1006  ;;  %v2454_v57 = vld [vmem:[%s3369_s1 + $0x38] sm:$0xf] }
 0x249   : > { %v1010_v4 = vsel %vm416_vm6, %v1007_v3, %v1009_v49  ;;  %v1013_v8 = vsel %vm416_vm6, 0.0, %v1007_v3 }
 0x24a   : > { %v1014_v2 = vmul.f32 %v2959_v25, %v1013_v8  ;;  %v1015_v9 = vmul.f32 %v2970_v32, %v1010_v4  ;;  %v1197_v10 = vpop.permute.xlu0 %1196  ;;  %2442 = vmatmul.mubr.msk.bf16.vlgmr.msra.gmra.mrb[4].mxu1 %vm310_vm8, %v2440_v61  ;;  %2443 = vmatprep.subr.msk.bf16.mxu0 %vm314_vm3, %v893_v63  ;;  %v960_v11 = vsel %vm314_vm3, %v892_v62, 0 }
 0x24b   : > { %v1201_v12 = vsel %vm606_vm11, %v1197_v10, 0.0  ;;  %966 = vmatpush1.bf16.msra.mxu0 %v960_v11  ;;  %1061 = vmatprep.mubr.bf16.mxu1 %v2772_v0 }
 0x24c   : > { %v1018_v14 = vpack.c.bf16 %v1014_v2, %v1014_v2  ;;  %v1019_v15 = vpack.c.bf16 %v1015_v9, %v1015_v9  ;;  %v1073_v1 = vpop.permute.xlu1 %1072  ;;  %v1203_v23 = vmul.f32 %v2970_v32, %v1201_v12  ;;  %v2457_v9 = vld [vmem:[%s3369_s1 + $0x3c] sm:$0xf] }
 0x24d   : > { %v1076_v16 = vsel %vm483_vm9, %v1073_v1, %v1075_v59  ;;  %v1079_v20 = vsel %vm483_vm9, 0.0, %v1073_v1 }
 0x24e   : > { %v1080_v24 = vmul.f32 %v2951_v18, %v1079_v20  ;;  %v1081_v26 = vmul.f32 %v2954_v19, %v1076_v16  ;;  %v1263_v27 = vpop.permute.xlu0 %1262  ;;  %2444 = vmatmul.mubr.msk.bf16.vlgmr.msra.gmra.mrb[32].mxu0 %vm310_vm8, %v2439_v13  ;;  %2446 = vmatprep.subr.msk.bf16.mxu1 %vm314_vm3, %v1019_v15  ;;  %v1024_v28 = vsel %vm314_vm3, %v1018_v14, 0  ;;  %v1207_v38 = vpack.c.bf16 %v1203_v23, %v1203_v23  ;;  %v2460_v13 = vld [vmem:[%s3369_s1 + $0x40] sm:$0xf]  ;;  %v2463_v14 = vld [vmem:[%s3369_s1 + $0x44] sm:$0xf] }
 0x24f   : > { %v1267_v29 = vsel %vm673_vm12, %v1263_v27, 0.0  ;;  %1030 = vmatpush1.bf16.msra.mxu1 %v1024_v28  ;;  %1127 = vmatprep.mubr.bf16.mxu0 %v2772_v0 }
 0x250   : > { %v1084_v31 = vpack.c.bf16 %v1080_v24, %v1080_v24  ;;  %v1085_v33 = vpack.c.bf16 %v1081_v26, %v1081_v26  ;;  %v1269_v34 = vmul.f32 %v2954_v19, %v1267_v29  ;;  %v1195_v35 = vpop.permute.xlu1 %1194  ;;  %2452 = vmatprep.subr.msk.bf16.mxu1 %vm314_vm3, %v1141_v21 }
 0x251   : > { %v1198_v36 = vsel %vm606_vm11, %v1195_v35, %v1197_v10 }
 0x252   : > { %v1273_v39 = vpack.c.bf16 %v1269_v34, %v1269_v34  ;;  %v1202_v40 = vmul.f32 %v2959_v25, %v1198_v36  ;;  %2447 = vmatmul.mubr.msk.bf16.vlgmr.msra.gmra.mrb[8].mxu1 %vm310_vm8, %v2445_v30  ;;  %2449 = vmatprep.subr.msk.bf16.mxu0 %vm314_vm3, %v1085_v33  ;;  %v1090_v41 = vsel %vm314_vm3, %v1084_v31, 0  ;;  %v1391_v59 = vpop.permute.xlu0 %1390 }
 0x253   : > { %1096 = vmatpush1.bf16.msra.mxu0 %v1090_v41  ;;  %1152 = vmatpush1.bf16.msra.mxu1 %v1146_v37 }
 0x254   : > { %v1206_v45 = vpack.c.bf16 %v1202_v40, %v1202_v40  ;;  %2455 = vmatprep.subr.msk.bf16.mxu0 %vm314_vm3, %v1207_v38  ;;  %v1261_v46 = vpop.permute.xlu1 %1260  ;;  %2458 = vmatprep.subr.msk.bf16.mxu1 %vm314_vm3, %v1273_v39 }
 0x255   : > { %v1264_v47 = vsel %vm673_vm12, %v1261_v46, %v1263_v27  ;;  %1183 = vmatprep.mubr.bf16.mxu1 %v2772_v0 }
 0x256   : > { %v1268_v48 = vmul.f32 %v2951_v18, %v1264_v47  ;;  %2450 = vmatmul.mubr.msk.bf16.vlgmr.msra.gmra.mrb[36].mxu0 %vm310_vm8, %v2448_v44  ;;  %v1212_v49 = vsel %vm314_vm3, %v1206_v45, 0 }
 0x257   : > { %1218 = vmatpush1.bf16.msra.mxu0 %v1212_v49  ;;  %1249 = vmatprep.mubr.bf16.mxu0 %v2772_v0 }
 0x258   : > { %v1272_v51 = vpack.c.bf16 %v1268_v48, %v1268_v48  ;;  %v2612_v52 = vpop.permute.xlu1 %2611 }
 0x259   : > { %v2614_v53 = vunpack.i.h.bf16 %v2612_v52  ;;  %v2613_v54 = vunpack.i.l.bf16 %v2612_v52 }
 0x25a   : > { %2453 = vmatmul.mubr.msk.bf16.vlgmr.msra.gmra.mrb[12].mxu1 %vm310_vm8, %v2451_v50  ;;  %v1278_v55 = vsel %vm314_vm3, %v1272_v51, 0 }
 0x25b   : > { %v1333_v56 = vsel %vm740_vm10, %v2614_v53, 0.0  ;;  %1284 = vmatpush1.bf16.msra.mxu1 %v1278_v55  ;;  %v1330_v58 = vsel %vm740_vm10, %v2613_v54, %v2614_v53  ;;  %1315 = vmatprep.mubr.bf16.mxu1 %v2772_v0 }
 0x25c   : > { %v1337_v60 = vpack.c.bf16 %v1333_v56, %v1333_v56  ;;  %v1393_v61 = vpop.permute.xlu1 %1392  ;;  %v1336_v62 = vpack.c.bf16 %v1330_v58, %v1330_v58 }
 0x25d   : > { %v1394_v63 = vsel %vm805_vm13, %v1391_v59, %v1393_v61  ;;  %v1397_v3 = vsel %vm805_vm13, %v1393_v61, 0.0 }
 0x25e   : > { %v1398_v4 = vmul.f32 %v2959_v25, %v1394_v63  ;;  %v1399_v8 = vmul.f32 %v2970_v32, %v1397_v3  ;;  %2456 = vmatmul.mubr.msk.bf16.vlgmr.msra.gmra.mrb[40].mxu0 %vm310_vm8, %v2454_v57  ;;  %2461 = vmatprep.subr.msk.bf16.mxu0 %vm314_vm3, %v1337_v60  ;;  %v1342_v2 = vsel %vm314_vm3, %v1336_v62, 0 }
 0x25f   : > { %1348 = vmatpush1.bf16.msra.mxu0 %v1342_v2  ;;  %1379 = vmatprep.mubr.bf16.mxu0 %v2772_v0 }
 0x260   : > { %v1402_v10 = vpack.c.bf16 %v1398_v4, %v1398_v4  ;;  %v1403_v11 = vpack.c.bf16 %v1399_v8, %v1399_v8 }
 0x262   : > { %2459 = vmatmul.mubr.msk.bf16.vlgmr.msra.gmra.mrb[16].mxu1 %vm310_vm8, %v2457_v9  ;;  %2464 = vmatprep.subr.msk.bf16.mxu1 %vm314_vm3, %v1403_v11  ;;  %v1408_v12 = vsel %vm314_vm3, %v1402_v10, 0 }
 0x263   : > { %1414 = vmatpush1.bf16.msra.mxu1 %v1408_v12  ;;  %1445 = vmatprep.mubr.bf16.mxu1 %v2772_v0 }
 0x266   : > { %2462 = vmatmul.mubr.msk.bf16.vlgmr.msra.gmra.mrb[44].mxu0 %vm310_vm8, %v2460_v13 }
 0x267   : > { %1529 = vmatprep.mubr.bf16.mxu0 %v2772_v0 }
 0x26a   : > { %2465 = vmatmul.mubr.msk.bf16.vlgmr.msra.gmra.mrb[20].mxu1 %vm310_vm8, %v2463_v14 }
 0x26b   : > { %1579 = vmatprep.mubr.bf16.mxu1 %v2772_v0 }
 0x31d   : > { %v949_v15 = vpop.f32.mrb[4].mxu1 }
 0x31e   : > { %v951_v1 = vpop.f32.mrb[5].mxu1 }
 0x31f   : > { %v953_v16 = vpop.f32.mrb[6].mxu1 }
 0x320   : > { %v954_v20 = vpop.f32.mrb[7].mxu1 }
 0x321   : > { %v999_v21 = vpop.f32.mrb[32].mxu0 }
 0x322   : > { %v1000_v22 = vadd.f32 %v999_v21, %v949_v15  ;;  %v1001_v23 = vpop.f32.mrb[33].mxu0 }
 0x323   : > { %v1002_v24 = vadd.f32 %v1001_v23, %v951_v1  ;;  %v1003_v26 = vpop.f32.mrb[34].mxu0 }
 0x324   : > { %v1004_v27 = vpop.f32.mrb[35].mxu0 }
 0x325   : > { %v1063_v28 = vpop.f32.mrb[8].mxu1 }
 0x326   : > { %v1070_v29 = vadd.f32 %v1063_v28, %v1000_v22  ;;  %v1065_v30 = vpop.f32.mrb[9].mxu1 }
 0x327   : > { %v1071_v31 = vadd.f32 %v1065_v30, %v1002_v24  ;;  %v1067_v33 = vpop.f32.mrb[10].mxu1 }
 0x328   : > { %v1068_v34 = vpop.f32.mrb[11].mxu1 }
 0x329   : > { %v1129_v35 = vpop.f32.mrb[36].mxu0 }
 0x32a   : > { %v1136_v36 = vadd.f32 %v1129_v35, %v1070_v29  ;;  %v1131_v37 = vpop.f32.mrb[37].mxu0 }
 0x32b   : > { %v1137_v38 = vadd.f32 %v1131_v37, %v1071_v31  ;;  %v1133_v39 = vpop.f32.mrb[38].mxu0 }
 0x32c   : > { %v1134_v40 = vpop.f32.mrb[39].mxu0 }
 0x32d   : > { %v1185_v41 = vpop.f32.mrb[12].mxu1 }
 0x32e   : > { %v1192_v44 = vadd.f32 %v1185_v41, %v1136_v36  ;;  %v1187_v45 = vpop.f32.mrb[13].mxu1  ;;  %v2467_v41 = vld [vmem:[%s3369_s1 + $0x4c] sm:$0xf] }
 0x32f   : > { %v1193_v46 = vadd.f32 %v1187_v45, %v1137_v38  ;;  %v1189_v47 = vpop.f32.mrb[14].mxu1 }
 0x330   : > { %v1190_v48 = vpop.f32.mrb[15].mxu1 }
 0x331   : > { %v1251_v49 = vpop.f32.mrb[40].mxu0 }
 0x332   : > { %v1258_v50 = vadd.f32 %v1251_v49, %v1192_v44  ;;  %v1253_v51 = vpop.f32.mrb[41].mxu0 }
 0x333   : > { %v1259_v52 = vadd.f32 %v1253_v51, %v1193_v46  ;;  %v1255_v53 = vpop.f32.mrb[42].mxu0 }
 0x334   : > { %v1256_v54 = vpop.f32.mrb[43].mxu0 }
 0x335   : > { %v1317_v55 = vpop.f32.mrb[16].mxu1 }
 0x336   : > { %v1324_v56 = vadd.f32 %v1317_v55, %v1258_v50  ;;  %v1319_v57 = vpop.f32.mrb[17].mxu1 }
 0x337   : > { %v1325_v58 = vadd.f32 %v1319_v57, %v1259_v52  ;;  %v1321_v59 = vpop.f32.mrb[18].mxu1  ;;  %v2466_v52 = vld [vmem:[%s3369_s1 + $0x48] sm:$0xf] }
 0x338   : > { %v1322_v60 = vpop.f32.mrb[19].mxu1 }
 0x339   : > { %v1381_v61 = vpop.f32.mrb[44].mxu0 }
 0x33a   : > { %v1388_v62 = vadd.f32 %v1381_v61, %v1324_v56  ;;  %v1383_v63 = vpop.f32.mrb[45].mxu0 }
 0x33b   : > { %v1389_v3 = vadd.f32 %v1383_v63, %v1325_v58  ;;  %v1385_v4 = vpop.f32.mrb[46].mxu0 }
 0x33c   : > { %v1386_v8 = vpop.f32.mrb[47].mxu0 }
 0x33d   : > { %v1447_v2 = vpop.f32.mrb[20].mxu1 }
 0x33e   : > { %v1454_v9 = vadd.f32 %v1447_v2, %v1388_v62  ;;  %v1449_v10 = vpop.f32.mrb[21].mxu1  ;;  %v2472_v62 = vld [vmem:[%s3369_s1 + $0x50] sm:$0xf] }
 0x33f   : > { %v1455_v11 = vadd.f32 %v1449_v10, %v1389_v3  ;;  %v1451_v12 = vpop.f32.mrb[22].mxu1 }
 0x340   : > { %v1456_v13 = vadd.f32 %v1454_v9, %v3055_v42  ;;  %v1452_v14 = vpop.f32.mrb[23].mxu1 }
 0x341   : > { %v1457_v15 = vadd.f32 %v1455_v11, %v3057_v43 }
 0x342   : > { %v3184_v1 = vmax.f32 %v1456_v13, 0.0 }
 0x343   : > { %v3186_v16 = vmax.f32 %v1457_v15, 0.0  ;;  %v2475_v15 = vld [vmem:[%s3369_s1 + $0x54] sm:$0xf] }
 0x344   : > { %1462 = vrot.lane.b32.xlu1 %v3184_v1, %s2773_s10  ;;  %v1722_v57 = vpack.c.bf16 %v3184_v1, %v3184_v1 }
 0x345   : > { %v2615_v20 = vpack.i.bf16 %v3186_v16, %v3184_v1  ;;  %v1723_v61 = vpack.c.bf16 %v3186_v16, %v3186_v16 }
 0x346   : > { %v1728_v9 = vsel %vm314_vm3, %v1722_v57, 0  ;;  %v2642_v57 = vld [vmem:[#allocation2 + $0x54] ss:$8 sps:$4 sm:$0xff]  }
 0x347   : > { %2616 = vrot.lane.b32.xlu0 %v2615_v20, %s2774_s11 }
 0x348   : > { %1588 = vrot.lane.b32.xlu1 %v3184_v1, %s2775_s12 }
 0x34b   : > { %1464 = vrot.lane.b32.xlu0 %v3186_v16, %s2773_s10 }
 0x34c   : > { %1654 = vrot.lane.b32.xlu1 %v3184_v1, %s2776_s13 }
 0x34f   : > { %1590 = vrot.lane.b32.xlu0 %v3186_v16, %s2775_s12  ;;  %s2782_s12 = smov 64  }
 0x350   : > { %1776 = vrot.lane.b32.xlu1 %v3184_v1, %s2777_s14 }
 0x353   : > { %1656 = vrot.lane.b32.xlu0 %v3186_v16, %s2776_s13  ;;  %s2783_s13 = smov 96  }
 0x354   : > { %1842 = vrot.lane.b32.xlu1 %v3184_v1, %s2778_s15 }
 0x357   : > { %1778 = vrot.lane.b32.xlu0 %v3186_v16, %s2777_s14  ;;  %s231_s14 = sand.u32 1, %s2759_s19  }
 0x358   : > { %2621 = vrot.lane.b32.xlu1 %v2615_v20, %s2779_s16  ;;  %s232_s8 = scalar_lea.vmem [#allocation5], %s231_s14  ;;  %s2322_s6 = scalar_lea.sflag [#allocation4], %s231_s14 }
 0x359   : > { %s2334_s30 = sshll.u32 %s232_s8, 4  ;;  %s3328_s30 = int_to_ptr.vmem [resolvable:$true] %s2334_s30 }
 0x35a   : > { %s2701_s9 = scalar_lea.vmem %s3328_s30, 16 }
 0x35b   : > { %1844 = vrot.lane.b32.xlu0 %v3186_v16, %s2778_s15  ;;  %p2702_p6 = scmp.ne.s32.totalorder %s3328_s30, %s2701_s9 }
 0x35c   : > { %1974 = vrot.lane.b32.xlu1 %v3186_v16, %s2780_s17 }
 0x35d   : > { %p2703_p10 = pnand %p2702_p6, %p3384_p9 }
 0x35f   : > { %1972 = vrot.lane.b32.xlu0 %v3184_v1, %s2780_s17  ;;  %s2527_s17 = sshll.u32 %s2836_s22, 4  ;;  %p2704_p12 = pneg %p2703_p10 }
 0x360   : > { %s3326_s26 = scalar_lea.hbm %s3373_s5, %s2527_s17  ;;  %s2784_s22 = smov [#allocation5]  }
 0x361   : > { %s2705_s7 = sshll.u32 %s2784_s22, 4  ;;  %s2706_s7 = int_to_ptr.vmem [resolvable:$false] %s2705_s7 }
 0x362   : > { %s2707_s10 = scalar_lea.vmem %s2706_s7, 32  ;;  %p2708_p2 = scmp.lt.s32.totalorder %s3328_s30, %s2706_s7 }
 0x363   : > { %p2709_p3 = scmp.lt.s32.totalorder %s2707_s10, %s2701_s9 }
 0x365   : > { %p2710_p4 = por %p2709_p3, %p2708_p2 }
 0x367   : > { %p2711_p7 = pnand %p2710_p4, %p2704_p12 }
 0x3b6   : > { %v1463_v42 = vpop.permute.xlu1 %1462 }
 0x3b7   : > { %v1469_v43 = vsel %vm287_vm4, 0.0, %v1463_v42 }
 0x3b8   : > { %v1470_v26 = vmul.f32 %v2951_v18, %v1469_v43 }
 0x3b9   : > { %v2617_v21 = vpop.permute.xlu0 %2616 }
 0x3ba   : > { %v2619_v22 = vunpack.i.h.bf16 %v2617_v21  ;;  %v2618_v23 = vunpack.i.l.bf16 %v2617_v21  ;;  %v1589_v24 = vpop.permute.xlu1 %1588  ;;  %v1474_v36 = vpack.c.bf16 %v1470_v26, %v1470_v26 }
 0x3bb   : > { %v1595_v29 = vsel %vm416_vm6, 0.0, %v1589_v24 }
 0x3bc   : > { %v1480_v27 = vsel %vm301_vm0, %v2618_v23, %v2619_v22  ;;  %v1483_v28 = vsel %vm301_vm0, 0.0, %v2618_v23  ;;  %v1596_v37 = vmul.f32 %v2959_v25, %v1595_v29  ;;  %v1542_v51 = vsel %vm314_vm3, %v1474_v36, 0 }
 0x3bd   : > { %v1486_v30 = vpack.c.bf16 %v1483_v28, %v1483_v28  ;;  %v1487_v31 = vpack.c.bf16 %v1480_v27, %v1480_v27  ;;  %v1465_v33 = vpop.permute.xlu0 %1464 }
 0x3be   : > { %v1466_v34 = vsel %vm287_vm4, %v1463_v42, %v1465_v33  ;;  %v1655_v35 = vpop.permute.xlu1 %1654  ;;  %v1600_v48 = vpack.c.bf16 %v1596_v37, %v1596_v37  ;;  %v2478_v33 = vld [vmem:[%s3369_s1 + $0x58] sm:$0xf]  ;;  %vm2319_vm4 = vcmask 253952  }
 0x3bf   : > { %v1471_v38 = vmul.f32 %v2954_v19, %v1466_v34  ;;  %2468 = vmatprep.subr.msk.bf16.mxu0 %vm314_vm3, %v1487_v31  ;;  %v1492_v39 = vsel %vm314_vm3, %v1486_v30, 0  ;;  %v1661_v40 = vsel %vm483_vm9, 0.0, %v1655_v35 }
 0x3c0   : > { %1498 = vmatpush1.bf16.msra.mxu0 %v1492_v39  ;;  %v1662_v49 = vmul.f32 %v2951_v18, %v1661_v40  ;;  %v1606_v60 = vsel %vm314_vm3, %v1600_v48, 0  ;;  %v2481_v40 = vld [vmem:[%s3369_s1 + $0x5c] sm:$0xf]  ;;  %v2625_v48 = vld [vmem:[#allocation2] ss:$8 sps:$4 sm:$0xff]  }
 0x3c1   : > { %v1475_v44 = vpack.c.bf16 %v1471_v38, %v1471_v38  ;;  %v1591_v45 = vpop.permute.xlu0 %1590 }
 0x3c2   : > { %v1592_v46 = vsel %vm416_vm6, %v1589_v24, %v1591_v45  ;;  %v1777_v47 = vpop.permute.xlu1 %1776  ;;  %v1666_v58 = vpack.c.bf16 %v1662_v49, %v1662_v49  ;;  %v2484_v45 = vld [vmem:[%s3369_s1 + $0x60] sm:$0xf]  ;;  %v2630_v49 = vld [vmem:[#allocation2 + $0x14] ss:$8 sps:$4 sm:$0xff]  }
 0x3c3   : > { %v1597_v50 = vmul.f32 %v2970_v32, %v1592_v46  ;;  %2469 = vmatmul.mubr.msk.bf16.vlgmr.msra.gmra.mrb[48].mxu0 %vm310_vm8, %v2467_v41  ;;  %2470 = vmatprep.subr.msk.bf16.mxu1 %vm314_vm3, %v1475_v44  ;;  %v2627_v41 = vld [vmem:[#allocation2 + $0x4] ss:$8 sps:$4 sm:$0xff]  }
 0x3c4   : > { %1548 = vmatpush1.bf16.msra.mxu1 %v1542_v51  ;;  %1643 = vmatprep.mubr.bf16.mxu0 %v2772_v0  ;;  %v1672_v13 = vsel %vm314_vm3, %v1666_v58, 0  ;;  %v2628_v51 = vld [vmem:[#allocation2 + $0x10] ss:$8 sps:$4 sm:$0xff]  }
 0x3c5   : > { %v1601_v53 = vpack.c.bf16 %v1597_v50, %v1597_v50  ;;  %v1657_v54 = vpop.permute.xlu0 %1656  ;;  %v2490_v50 = vld [vmem:[%s3369_s1 + $0x68] sm:$0xf]  ;;  %v2640_v58 = vld [vmem:[#allocation2 + $0x50] ss:$8 sps:$4 sm:$0xff]  }
 0x3c6   : > { %v1658_v55 = vsel %vm483_vm9, %v1655_v35, %v1657_v54  ;;  %v1843_v56 = vpop.permute.xlu1 %1842  ;;  %v2636_v54 = vld [vmem:[#allocation2 + $0x34] ss:$8 sps:$4 sm:$0xff]  }
 0x3c7   : > { %v1663_v59 = vmul.f32 %v2954_v19, %v1658_v55  ;;  %2471 = vmatmul.mubr.msk.bf16.vlgmr.msra.gmra.mrb[24].mxu1 %vm310_vm8, %v2466_v52  ;;  %2473 = vmatprep.subr.msk.bf16.mxu0 %vm314_vm3, %v1601_v53  ;;  %v2633_v52 = vld [vmem:[#allocation2 + $0x24] ss:$8 sps:$4 sm:$0xff]   ;;  %v2631_v53 = vld [vmem:[#allocation2 + $0x20] ss:$8 sps:$4 sm:$0xff]  }
 0x3c8   : > { %1612 = vmatpush1.bf16.msra.mxu0 %v1606_v60  ;;  %1709 = vmatprep.mubr.bf16.mxu1 %v2772_v0  ;;  %v2639_v55 = vld [vmem:[#allocation2 + $0x44] ss:$8 sps:$4 sm:$0xff]  }
 0x3c9   : > { %v1667_v63 = vpack.c.bf16 %v1663_v59, %v1663_v59  ;;  %v1779_v3 = vpop.permute.xlu0 %1778  ;;  %2479 = vmatprep.subr.msk.bf16.mxu0 %vm314_vm3, %v1723_v61  ;;  %v2643_v59 = vld [vmem:[#allocation2 + $0x60] ss:$8 sps:$4 sm:$0xff]   ;;  %v2645_v60 = vld [vmem:[#allocation2 + $0x64] ss:$8 sps:$4 sm:$0xff]   ;;  %v2646_v61 = vld [vmem:[#allocation2 + $0x70] ss:$8 sps:$4 sm:$0xff]  }
 0x3ca   : > { %v1780_v4 = vsel %vm606_vm11, %v1777_v47, %v1779_v3  ;;  %v1783_v8 = vsel %vm606_vm11, %v1779_v3, 0.0  ;;  %v2622_v2 = vpop.permute.xlu1 %2621  ;;  %v2487_v47 = vld [vmem:[%s3369_s1 + $0x64] sm:$0xf] }
 0x3cb   : > { %v1784_v10 = vmul.f32 %v2959_v25, %v1780_v4  ;;  %v1785_v11 = vmul.f32 %v2970_v32, %v1783_v8  ;;  %v2624_v12 = vunpack.i.h.bf16 %v2622_v2  ;;  %2474 = vmatmul.mubr.msk.bf16.vlgmr.msra.gmra.mrb[52].mxu0 %vm310_vm8, %v2472_v62  ;;  %2476 = vmatprep.subr.msk.bf16.mxu1 %vm314_vm3, %v1667_v63  ;;  %v2623_v14 = vunpack.i.l.bf16 %v2622_v2  ;;  %v2648_v62 = vld [vmem:[#allocation2 + $0x74] ss:$8 sps:$4 sm:$0xff]   ;;  %v2649_v63 = vld [vmem:[#allocation2 + $0x80] ss:$8 sps:$4 sm:$0xff]   ;;  %v2651_v3 = vld [vmem:[#allocation2 + $0x84] ss:$8 sps:$4 sm:$0xff]  }
 0x3cc   : > { %1678 = vmatpush1.bf16.msra.mxu1 %v1672_v13  ;;  %1734 = vmatpush1.bf16.msra.mxu0 %v1728_v9  ;;  %v2652_v4 = vld [vmem:[#allocation2 + $0x90] ss:$8 sps:$4 sm:$0xff]   ;;  %v2654_v8 = vld [vmem:[#allocation2 + $0x94] ss:$8 sps:$4 sm:$0xff]   ;;  %v2655_v2 = vld [vmem:[#allocation2 + $0xa0] ss:$8 sps:$4 sm:$0xff]  }
 0x3cd   : > { %v1788_v20 = vpack.c.bf16 %v1784_v10, %v1784_v10  ;;  %v1789_v42 = vpack.c.bf16 %v1785_v11, %v1785_v11  ;;  %v1915_v43 = vsel %vm740_vm10, %v2624_v12, 0.0  ;;  %v1845_v21 = vpop.permute.xlu0 %1844  ;;  %1765 = vmatprep.mubr.bf16.mxu0 %v2772_v0  ;;  %v2657_v9 = vld [vmem:[#allocation2 + $0xa4] ss:$8 sps:$4 sm:$0xff]   ;;  %v2658_v10 = vld [vmem:[#allocation2 + $0xb0] ss:$8 sps:$4 sm:$0xff]  }
 0x3ce   : > { %v1919_v22 = vpack.c.bf16 %v1915_v43, %v1915_v43  ;;  %v1846_v23 = vsel %vm673_vm12, %v1843_v56, %v1845_v21  ;;  %v1849_v24 = vsel %vm673_vm12, %v1845_v21, 0.0  ;;  %v1975_v26 = vpop.permute.xlu1 %1974  ;;  %v2637_v56 = vld [vmem:[#allocation2 + $0x40] ss:$8 sps:$4 sm:$0xff]   ;;  %v2660_v11 = vld [vmem:[#allocation2 + $0xb4] ss:$8 sps:$4 sm:$0xff]  }
 0x3cf   : > { %v1850_v27 = vmul.f32 %v2951_v18, %v1846_v23  ;;  %v1851_v28 = vmul.f32 %v2954_v19, %v1849_v24  ;;  %v1979_v29 = vsel %vm805_vm13, %v1975_v26, 0.0  ;;  %2477 = vmatmul.mubr.msk.bf16.vlgmr.msra.gmra.mrb[28].mxu1 %vm310_vm8, %v2475_v15  ;;  %2482 = vmatprep.subr.msk.bf16.mxu1 %vm314_vm3, %v1789_v42  ;;  %v1794_v30 = vsel %vm314_vm3, %v1788_v20, 0  ;;  %v2663_v13 = vld [vmem:[#allocation2 + $0xc4] ss:$8 sps:$4 sm:$0xff]   ;;  %v2666_v15 = vld [vmem:[#allocation2 + $0xd4] ss:$8 sps:$4 sm:$0xff]  }
 0x3d0   : > { %v1981_v31 = vmul.f32 %v2970_v32, %v1979_v29  ;;  %1800 = vmatpush1.bf16.msra.mxu1 %v1794_v30  ;;  %1831 = vmatprep.mubr.bf16.mxu1 %v2772_v0  ;;  %v1912_v18 = vsel %vm740_vm10, %v2623_v14, %v2624_v12  ;;  %v2661_v12 = vld [vmem:[#allocation2 + $0xc0] ss:$8 sps:$4 sm:$0xff]   ;;  %v2664_v14 = vld [vmem:[#allocation2 + $0xd0] ss:$8 sps:$4 sm:$0xff]   ;;  %v2669_v20 = vld [vmem:[#allocation2 + $0xe4] ss:$8 sps:$4 sm:$0xff]  }
 0x3d1   : > { %v1854_v19 = vpack.c.bf16 %v1850_v27, %v1850_v27  ;;  %v1855_v34 = vpack.c.bf16 %v1851_v28, %v1851_v28  ;;  %v1973_v35 = vpop.permute.xlu0 %1972  ;;  %2488 = vmatprep.subr.msk.bf16.mxu1 %vm314_vm3, %v1919_v22  ;;  %v1918_v39 = vpack.c.bf16 %v1912_v18, %v1912_v18  ;;  %v2667_v42 = vld [vmem:[#allocation2 + $0xe0] ss:$8 sps:$4 sm:$0xff]   ;;  %v2672_v43 = vld [vmem:[#allocation2 + $0xf4] ss:$8 sps:$4 sm:$0xff]   ;;  %v2670_v21 = vld [vmem:[#allocation2 + $0xf0] ss:$8 sps:$4 sm:$0xff]  }
 0x3d2   : > { %v1985_v36 = vpack.c.bf16 %v1981_v31, %v1981_v31  ;;  %v1976_v37 = vsel %vm805_vm13, %v1973_v35, %v1975_v26 }
 0x3d3   : > { %v1980_v38 = vmul.f32 %v2959_v25, %v1976_v37  ;;  %2480 = vmatmul.mubr.msk.bf16.vlgmr.msra.gmra.mrb[56].mxu0 %vm310_vm8, %v2478_v33  ;;  %2485 = vmatprep.subr.msk.bf16.mxu0 %vm314_vm3, %v1855_v34  ;;  %v1860_v32 = vsel %vm314_vm3, %v1854_v19, 0  ;;  %v1924_v25 = vsel %vm314_vm3, %v1918_v39, 0 }
 0x3d4   : > { %1866 = vmatpush1.bf16.msra.mxu0 %v1860_v32  ;;  %1897 = vmatprep.mubr.bf16.mxu0 %v2772_v0 }
 0x3d5   : > { %2491 = vmatprep.subr.msk.bf16.mxu0 %vm314_vm3, %v1985_v36  ;;  %v1984_v44 = vpack.c.bf16 %v1980_v38, %v1980_v38 }
 0x3d7   : > { %2483 = vmatmul.mubr.msk.bf16.vlgmr.msra.gmra.mrb[32].mxu1 %vm310_vm8, %v2481_v40  ;;  %v1990_v46 = vsel %vm314_vm3, %v1984_v44, 0 }
 0x3d8   : > { %1930 = vmatpush1.bf16.msra.mxu1 %v1924_v25  ;;  %1961 = vmatprep.mubr.bf16.mxu1 %v2772_v0 }
 0x3d9   : > { %2236 = vmatprep.subr.bf16.mxu1 %v2627_v41 }
 0x3db   : > { %2486 = vmatmul.mubr.msk.bf16.vlgmr.msra.gmra.mrb[60].mxu0 %vm310_vm8, %v2484_v45 }
 0x3dc   : > { %1996 = vmatpush1.bf16.msra.mxu0 %v1990_v46  ;;  %2027 = vmatprep.mubr.bf16.mxu0 %v2772_v0  ;;  %v2634_v0 = vld [vmem:[#allocation2 + $0x30] ss:$8 sps:$4 sm:$0xff]  }
 0x3df   : > { %2489 = vmatmul.mubr.msk.bf16.vlgmr.msra.gmra.mrb[36].mxu1 %vm310_vm8, %v2487_v47 }
 0x3e0   : > { %2237 = vmatpush1.bf16.msra.mxu1 %v2625_v48 }
 0x3e1   : > { %2238 = vmatprep.subr.bf16.mxu1 %v2630_v49 }
 0x3e3   : > { %2492 = vmatmul.mubr.msk.bf16.vlgmr.msra.gmra.mrb[64].mxu0 %vm310_vm8, %v2490_v50 }
 0x3e4   : > { %2239 = vmatpush1.bf16.msra.mxu1 %v2628_v51 }
 0x3e5   : > { %2240 = vmatprep.subr.bf16.mxu1 %v2633_v52 }
 0x3e8   : > { %2241 = vmatpush1.bf16.msra.mxu1 %v2631_v53 }
 0x3e9   : > { %2242 = vmatprep.subr.bf16.mxu1 %v2636_v54 }
 0x3ec   : > { %2243 = vmatpush1.bf16.msra.mxu1 %v2634_v0 }
 0x3ed   : > { %2244 = vmatprep.subr.bf16.mxu1 %v2639_v55 }
 0x3f0   : > { %2245 = vmatpush1.bf16.msra.mxu1 %v2637_v56 }
 0x3f1   : > { %2246 = vmatprep.subr.bf16.mxu1 %v2642_v57 }
 0x3f4   : > { %2247 = vmatpush1.bf16.msra.mxu1 %v2640_v58 }
 0x3f5   : > { %2248 = vmatprep.subr.bf16.mxu1 %v2645_v60 }
 0x3f8   : > { %2249 = vmatpush1.bf16.msra.mxu1 %v2643_v59 }
 0x3f9   : > { %2250 = vmatprep.subr.bf16.mxu1 %v2648_v62 }
 0x3fc   : > { %2251 = vmatpush1.bf16.msra.mxu1 %v2646_v61 }
 0x3fd   : > { %2252 = vmatprep.subr.bf16.mxu1 %v2651_v3 }
 0x400   : > { %2253 = vmatpush1.bf16.msra.mxu1 %v2649_v63 }
 0x401   : > { %2254 = vmatprep.subr.bf16.mxu1 %v2654_v8 }
 0x404   : > { %2255 = vmatpush1.bf16.msra.mxu1 %v2652_v4 }
 0x405   : > { %2256 = vmatprep.subr.bf16.mxu1 %v2657_v9 }
 0x408   : > { %2257 = vmatpush1.bf16.msra.mxu1 %v2655_v2 }
 0x409   : > { %2258 = vmatprep.subr.bf16.mxu1 %v2660_v11 }
 0x40c   : > { %2259 = vmatpush1.bf16.msra.mxu1 %v2658_v10 }
 0x40d   : > { %2260 = vmatprep.subr.bf16.mxu1 %v2663_v13 }
 0x410   : > { %2261 = vmatpush1.bf16.msra.mxu1 %v2661_v12 }
 0x411   : > { %2262 = vmatprep.subr.bf16.mxu1 %v2666_v15 }
 0x414   : > { %2263 = vmatpush1.bf16.msra.mxu1 %v2664_v14 }
 0x415   : > { %2264 = vmatprep.subr.bf16.mxu1 %v2669_v20 }
 0x418   : > { %2265 = vmatpush1.bf16.msra.mxu1 %v2667_v42 }
 0x419   : > { %2266 = vmatprep.subr.bf16.mxu1 %v2672_v43 }
 0x41c   : > { %2267 = vmatpush1.bf16.msra.mxu1 %v2670_v21 }
 0x496   : > { %v1531_v22 = vpop.f32.mrb[48].mxu0 }
 0x497   : > { %v1533_v23 = vpop.f32.mrb[49].mxu0 }
 0x498   : > { %v1535_v24 = vpop.f32.mrb[50].mxu0 }
 0x499   : > { %v1536_v26 = vpop.f32.mrb[51].mxu0 }
 0x49a   : > { %v1581_v27 = vpop.f32.mrb[24].mxu1 }
 0x49b   : > { %v1582_v28 = vadd.f32 %v1581_v27, %v1531_v22  ;;  %v1583_v29 = vpop.f32.mrb[25].mxu1  ;;  %v2278_v22 = vshrl.u32 %v240_v5, 7 }
 0x49c   : > { %v1584_v30 = vadd.f32 %v1583_v29, %v1533_v23  ;;  %v1585_v31 = vpop.f32.mrb[26].mxu1 }
 0x49d   : > { %v1586_v33 = vpop.f32.mrb[27].mxu1  ;;  %v2279_v23 = vmul.u32 32, %v2278_v22 }
 0x49e   : > { %v1645_v18 = vpop.f32.mrb[52].mxu0 }
 0x49f   : > { %v1652_v19 = vadd.f32 %v1645_v18, %v1582_v28  ;;  %v1647_v34 = vpop.f32.mrb[53].mxu0  ;;  %v2282_v24 = vadd.s32 32, %v2279_v23  ;;  %vm2280_vm14 = vcmp.ge.s32.totalorder %v2941_v6, %v2279_v23  ;;  %vm2281_vm0 = vcmp.ge.s32.totalorder %v2944_v7, %v2279_v23 }
 0x4a0   : > { %v1653_v35 = vadd.f32 %v1647_v34, %v1584_v30  ;;  %v1649_v36 = vpop.f32.mrb[54].mxu0 }
 0x4a1   : > { %v1650_v37 = vpop.f32.mrb[55].mxu0  ;;  %vm2283_vm15 = vcmp.lt.s32.totalorder %v2941_v6, %v2282_v24  ;;  %vm2284_vm1 = vcmp.lt.s32.totalorder %v2944_v7, %v2282_v24 }
 0x4a2   : > { %v1711_v38 = vpop.f32.mrb[28].mxu1  ;;  %vm2285_vm2 = vmand %vm2280_vm14, %vm2283_vm15 }
 0x4a3   : > { %v1718_v32 = vadd.f32 %v1711_v38, %v1652_v19  ;;  %v1713_v39 = vpop.f32.mrb[29].mxu1  ;;  %vm2286_vm3 = vmand %vm2281_vm0, %vm2284_vm1 }
 0x4a4   : > { %v1719_v40 = vadd.f32 %v1713_v39, %v1653_v35  ;;  %v1715_v41 = vpop.f32.mrb[30].mxu1 }
 0x4a5   : > { %v1716_v44 = vpop.f32.mrb[31].mxu1  ;;  %v2316_v41 = vld [vmem:[%s3372_s4] sm:$0x1] }
 0x4a6   : > { %v1767_v25 = vpop.f32.mrb[56].mxu0 }
 0x4a7   : > { %v1774_v45 = vadd.f32 %v1767_v25, %v1718_v32  ;;  %v1769_v46 = vpop.f32.mrb[57].mxu0 }
 0x4a8   : > { %v1775_v47 = vadd.f32 %v1769_v46, %v1719_v40  ;;  %v1771_v48 = vpop.f32.mrb[58].mxu0 }
 0x4a9   : > { %v1772_v49 = vpop.f32.mrb[59].mxu0 }
 0x4aa   : > { %v1833_v50 = vpop.f32.mrb[32].mxu1 }
 0x4ab   : > { %v1840_v51 = vadd.f32 %v1833_v50, %v1774_v45  ;;  %v1835_v52 = vpop.f32.mrb[33].mxu1 }
 0x4ac   : > { %v1841_v53 = vadd.f32 %v1835_v52, %v1775_v47  ;;  %v1837_v54 = vpop.f32.mrb[34].mxu1 }
 0x4ad   : > { %v1838_v0 = vpop.f32.mrb[35].mxu1 }
 0x4ae   : > { %v1899_v55 = vpop.f32.mrb[60].mxu0 }
 0x4af   : > { %v1906_v56 = vadd.f32 %v1899_v55, %v1840_v51  ;;  %v1901_v57 = vpop.f32.mrb[61].mxu0 }
 0x4b0   : > { %v1907_v58 = vadd.f32 %v1901_v57, %v1841_v53  ;;  %v1903_v59 = vpop.f32.mrb[62].mxu0 }
 0x4b1   : > { %v1904_v60 = vpop.f32.mrb[63].mxu0 }
 0x4b2   : > { %v1963_v61 = vpop.f32.mrb[36].mxu1 }
 0x4b3   : > { %v1970_v62 = vadd.f32 %v1963_v61, %v1906_v56  ;;  %v1965_v63 = vpop.f32.mrb[37].mxu1 }
 0x4b4   : > { %v1971_v3 = vadd.f32 %v1965_v63, %v1907_v58  ;;  %v1967_v4 = vpop.f32.mrb[38].mxu1 }
 0x4b5   : > { %v1968_v8 = vpop.f32.mrb[39].mxu1 }
 0x4b6   : > { %v2029_v2 = vpop.f32.mrb[64].mxu0 }
 0x4b7   : > { %v2036_v9 = vadd.f32 %v2029_v2, %v1970_v62  ;;  %v2031_v10 = vpop.f32.mrb[65].mxu0 }
 0x4b8   : > { %v2037_v11 = vadd.f32 %v2031_v10, %v1971_v3  ;;  %v2033_v12 = vpop.f32.mrb[66].mxu0 }
 0x4b9   : > { %v2038_v13 = vadd.f32 %v2036_v9, %v3184_v1  ;;  %v2034_v14 = vpop.f32.mrb[67].mxu0  ;;  %v2525_v1 = vsel %vm2285_vm2, 1.0, %v2781_v17 }
 0x4ba   : > { %v2039_v15 = vadd.f32 %v2037_v11, %v3186_v16  ;;  %v2526_v16 = vsel %vm2286_vm3, 1.0, %v2781_v17 }
 0x4bb   : > { %v2040_v20 = vmax.f32 %v2038_v13, 0.0 }
 0x4bc   : > { %v2041_v42 = vmax.f32 %v2039_v15, 0.0 }
 0x4bd   : > { %v2042_v21 = vpack.c.bf16 %v2040_v20, %v2040_v20 }
 0x4be   : > { %v2043_v43 = vpack.c.bf16 %v2041_v42, %v2041_v42 }
 0x4c0   : > { %2268 = vmatprep.mubr.bf16.mxu1 %v2043_v43 }
 0x4c1   : > { %2269 = vmatmul.mubr.bf16.vlgmr.msra.gmra.mrb[40].mxu1 %v2042_v21 }
 0x594   : > { %v2270_v26 = vpop.f32.mrb[40].mxu1 }
 0x595   : > { %v2291_v27 = vmul.f32 %v2525_v1, %v2270_v26  ;;  %v2272_v28 = vpop.f32.mrb[41].mxu1 }
 0x596   : > { %v2292_v5 = vmul.f32 %v2526_v16, %v2272_v28  ;;  %v2274_v29 = vpop.f32.mrb[42].mxu1 }
 0x597   : > { %v2293_v30 = vrot.slane %v2291_v27, 4  ;;  %v2275_v31 = vpop.f32.mrb[43].mxu1 }
 0x598   : > { %v2299_v33 = vrot.slane %v2292_v5, 4 }
 0x599   : > { %v2294_v18 = vadd.f32 %v2293_v30, %v2291_v27 }
 0x59a   : > { %v2300_v6 = vadd.f32 %v2299_v33, %v2292_v5 }
 0x59b   : > { %v2295_v19 = vrot.slane %v2294_v18, 2 }
 0x59c   : > { %v2301_v34 = vrot.slane %v2300_v6, 2 }
 0x59d   : > { %v2296_v7 = vadd.f32 %v2295_v19, %v2294_v18 }
 0x59e   : > { %v2302_v35 = vadd.f32 %v2301_v34, %v2300_v6 }
 0x59f   : > { %v2297_v36 = vrot.slane %v2296_v7, 1 }
 0x5a0   : > { %v2303_v37 = vrot.slane %v2302_v35, 1 }
 0x5a1   : > { %v2298_v38 = vadd.f32 %v2297_v36, %v2296_v7 }
 0x5a2   : > { %v2304_v17 = vadd.f32 %v2303_v37, %v2302_v35 }
 0x5a4   : > { %v2305_v32 = vadd.f32 %v2304_v17, %v2298_v38 }
 0x5a6   : > { %2307 = vrot.lane.b32.xlu0 %v2305_v32, %s2782_s12 }
 0x618   : > { %v2308_v39 = vpop.permute.xlu0 %2307 }
 0x619   : > { %v2310_v40 = vadd.f32 %v2308_v39, %v2305_v32 }
 0x61b   : > { %2312 = vrot.lane.b32.xlu1 %v2310_v40, %s2783_s13 }
 0x68d   : > { %v2313_v44 = vpop.permute.xlu1 %2312 }
 0x68e   : > { %v2315_v25 = vadd.f32 %v2313_v44, %v2310_v40 }
 0x690   : > { %v2317_v45 = vadd.f32 %v2316_v41, %v2315_v25 }
 0x692   : > { %v2318_v46 = vmax.f32 %v2317_v45, 0.0 }
 0x694   : > { %2320 = vst.msk [vmem:[%s232_s8] sm:$0x1] %vm2319_vm4, %v2318_v46 }
 0x695   : > { %2714 = shalt.err (!%p2711_p7)
}
 0x696   : > { %s2715_s11 = scalar_lea.hbm %s3326_s26, 16  ;;  %s2719_s14 = scalar_lea.hbm %s3373_s5, 32 }
 0x697   : > { %p2716_p8 = scmp.ne.s32.totalorder %s3326_s26, %s2715_s11  ;;  %p2720_p1 = scmp.lt.u32.totalorder %s3326_s26, %s3373_s5 }
 0x698   : > { %p2721_p0 = scmp.lt.u32.totalorder %s2719_s14, %s2715_s11  ;;  %p2723_p6 = scmp.lt.u32.totalorder %s2715_s11, %s3326_s26 }
 0x699   : > { %p2717_p11 = pnand %p2716_p8, %p3384_p9 }
 0x69a   : > { %p2722_p5 = por %p2721_p0, %p2720_p1 }
 0x69b   : > { %p2718_p13 = pneg %p2717_p11 }
 0x69c   : > { %p2724_p10 = por %p2723_p6, %p2722_p5 }
 0x69e   : > { %p2725_p12 = pnand %p2724_p10, %p2718_p13 }
 0x6a0   : > { %2728 = shalt.err (!%p2725_p12)
}
 0x6a1   : > { %2534 = dma.vmem_to_hbm [thread:$0]  (%p3384_p9), %s3328_s30, 16, %s3326_s26, %s2322_s6  }
 0x6a2 PF: > { %p2546_p2 = scmp.ge.s32.totalorder %s2767_s21, 2  ;;  %s2346_s17 = sand.u32 1, %s2755_s18  }
 0x6a3   : > { %p3385_p3 = scmp.ne.s32.totalorder %s3378_s29, 0  ;;  %s2347_s8 = scalar_lea.sflag [#allocation4], %s2346_s17 }
 0x6a5   : > { %p2541_p4 = pnand %p2546_p2, %p3385_p3 }
 0x6a7   : > { %2750 = dma.done.wait (!%p2541_p4), %s2347_s8, 16  }
 0x6a8   : > { %2752 = vsyncadd (!%p2541_p4), %s2347_s8, 4294967280  ;;  %p16_p7 = scmp.ge.s32.totalorder %s2840_s24, 4   ;;  %s3386_s18 = smov %s2759_s19 }
 0x6a9   : > { %s3387_s19 = smov %s2763_s20  ;;  %s3388_s20 = smov %s2851_s27 }
 0x6aa   : > { %s3389_s21 = smov %s2840_s24  ;;  %18 = sbr.rel (!%p16_p7) target bundleno = 4 (0x4), region = 106 }
 0x6b1   :  { %2351 = vsyncpa [#allocation3], 1 }
 0x6b2   :  { %2353 = vsyncpa [#allocation3 + $0x1], 1 }
 0x6b3   :  { %2354 = vsyncpa [#allocation4], 1 }
 0x6b4   :  { %2356 = vsyncpa [#allocation4 + $0x1], 1 }

</bundles_post_ra>
